<compile_context>
chip_gen: v7x
topology: tpu7x:2x2x1
jax: 0.10.0
libtpu: 0.0.40
codegen_flags: <defaults>
</compile_context>

<pallas_src>
from functools import partial

import jax
import jax.numpy as jnp
from jax.experimental import pallas as pl
from jax.experimental.pallas import tpu as pltpu

# ---------------- synthetic config (mirrors cfg.NETWORK.*) ----------------
NUM_CHANNELS      = 32   # cfg.NETWORK.NUM_CHANNELS
TRANSFORM_DIM     = 4    # cfg.NETWORK.TRANSFORM_DIM
TEMPORAL_LEN      = 27   # cfg.NETWORK.TEMPORAL_LENGTH  (T)
NUM_JOINTS        = 17
NUM_SHRINK_LAYERS = 2    # Pose3dShrinkOther.num_layers -> receptive field 3^(L+1) = 27
IN_COORD          = 2    # 2D input coordinates per joint
# cfg.NETWORK.USE_MFT = False  -> FuseView branch skipped (eval forward path)


def _round_up(x, m):
    return ((x + m - 1) // m) * m


# --------------------------------------------------------------------------
# Kernel: ALL samples in one grid step.  S samples' channels are packed along
# lanes (block-diagonal weights), the remaining G groups are stacked along the
# sublane/time axis, so every matmul is one shared MXU op for all samples and
# every temporal shift / residual crop is a per-group sublane slice.
# --------------------------------------------------------------------------
def _fuse_views_kernel(x_ref, wemb_ref, wconv_ref, w1x1_ref, whead_ref, b_ref,
                       f_out_ref, out_ref, *, groups, t_len, layers):
    G, T, L = groups, t_len, layers
    SC = w1x1_ref.shape[1]                 # packed lane width = S * NUM_CHANNELS

    def bias(j, width):                    # (1, width) row of the 2-D bias slab
        return b_ref[j:j + 1, 0:width]

    def mm(a, w):                          # bf16 MXU matmul, f32 accumulate
        return jnp.dot(a.astype(jnp.bfloat16), w,
                       preferred_element_type=jnp.float32)

    # --- pre_embedding + MHF stand-in: linear + ReLU ---
    # TODO(synk): pre_proj / MHF (and FuseView) definitions are not in the
    # provided source; a deterministic linear embedding stand-in produces f.
    x = x_ref[0]                                                    # (G*T, S*KP)
    f = jnp.maximum(mm(x, wemb_ref[...]) + bias(0, SC), 0.0)        # (G*T, SC)
    f_out_ref[0] = f                                                # f_fuse_before

    # k=3 temporal conv (dilation d) as ONE shared matmul for all row-stacked
    # groups (3 taps concatenated along N) + per-group shifted adds; eval
    # BatchNorm folded into the weights.  When only the single centre row
    # survives (last dilated layer), gather the 3 needed rows per group first.
    def conv3(h, t_in, d, w_idx, b_idx):
        t_out = t_in - 2 * d
        w = wconv_ref[w_idx]
        if t_out == 1 and t_in > 3:
            rows = []
            for g in range(G):
                base = g * t_in
                rows += [h[base:base + 1],
                         h[base + d:base + d + 1],
                         h[base + 2 * d:base + 2 * d + 1]]
            p = mm(jnp.concatenate(rows, axis=0), w)                # (3*G, 3*SC)
            out = jnp.concatenate(
                [p[3 * g:3 * g + 1, 0:SC]
                 + p[3 * g + 1:3 * g + 2, SC:2 * SC]
                 + p[3 * g + 2:3 * g + 3, 2 * SC:3 * SC]
                 for g in range(G)], axis=0)                        # (G, SC)
        else:
            p = mm(h, w)                                            # (G*t_in, 3*SC)
            outs = []
            for g in range(G):
                base = g * t_in
                outs.append(p[base:base + t_out, 0:SC]
                            + p[base + d:base + d + t_out, SC:2 * SC]
                            + p[base + 2 * d:base + 2 * d + t_out, 2 * SC:3 * SC])
            out = jnp.concatenate(outs, axis=0)                     # (G*t_out, SC)
        return jnp.maximum(out + bias(b_idx, SC), 0.0), t_out

    # --- Pose3dShrink_out: conv_1 + BN + ReLU (+ dropout = identity in eval) ---
    h, t = conv3(f, T, 1, 0, 1)

    # --- dilated residual blocks (eval: res = x[:, :, 3**(i+1):-3**(i+1)]) ---
    for i in range(L):
        d = 3 ** (i + 1)
        g_out, t_out = conv3(h, t, d, 1 + i, 2 + 2 * i)
        g_out = jnp.maximum(mm(g_out, w1x1_ref[i]) + bias(3 + 2 * i, SC), 0.0)
        res = jnp.concatenate(
            [h[g * t + d:g * t + d + t_out] for g in range(G)], axis=0)
        h = res + g_out
        t = t_out

    # --- Head stand-in: linear C -> num_joints*3 ---
    # TODO(synk): Head class definition not provided; linear projection used.
    y = mm(h, whead_ref[...]) + bias(2 + 2 * L, whead_ref.shape[1])
    out_ref[0] = y                                                  # (G*tp, S*JP)


# --------------------------------------------------------------------------
# One-time parameter packing: block-diagonal, lane-dense bf16 slabs.
# --------------------------------------------------------------------------
def pack_params(params, lane_group):
    """Pack per-sample weights so `lane_group` samples share each lane group.

    Lane layout is sample-major (lane = s*width + feature); weights become
    block-diagonal via kron(I_S, w) and are stored in bf16.  Input/head widths
    are padded so S*KP and S*JP are multiples of 128 (unmasked loads/stores)."""
    we, be, w1, b1, wa, ba, wb, bb, wh, bh = params
    VC, C = we.shape
    J3 = wh.shape[1]
    L = wa.shape[0]
    S = lane_group

    KP = _round_up(VC, 8)                  # per-sample input features (34 -> 64)
    while (S * KP) % 128:
        KP += 8
    JP = _round_up(J3, 8)                  # per-sample head outputs (51 -> 64)
    while (S * JP) % 128:
        JP += 8

    eye = jnp.eye(S, dtype=jnp.float32)

    def blk(w):                            # (k, n) -> block-diagonal (S*k, S*n)
        return jnp.kron(eye, w)

    def pad2(w, k, n):
        return jnp.pad(w, ((0, k - w.shape[0]), (0, n - w.shape[1])))

    w_emb = blk(pad2(we, KP, C)).astype(jnp.bfloat16)              # (S*KP, S*C)
    w_conv = jnp.stack(
        [jnp.concatenate([blk(w1[k]) for k in range(3)], axis=1)]
        + [jnp.concatenate([blk(wa[i][k]) for k in range(3)], axis=1)
           for i in range(L)], axis=0).astype(jnp.bfloat16)        # (1+L, S*C, 3*S*C)
    w_1x1 = jnp.stack([blk(wb[i]) for i in range(L)],
                      axis=0).astype(jnp.bfloat16)                 # (L, S*C, S*C)
    w_head = blk(pad2(wh, C, JP)).astype(jnp.bfloat16)             # (S*C, S*JP)

    BW = max(S * C, S * JP)

    def bvec(b, per):                      # bias -> tiled, padded (BW,) f32 row
        v = jnp.pad(b.reshape(-1), (0, per - b.shape[-1]))
        v = jnp.tile(v, S)
        return jnp.pad(v, (0, BW - v.shape[0]))

    rows = [bvec(be, C), bvec(b1, C)]
    for i in range(L):
        rows += [bvec(ba[i], C), bvec(bb[i], C)]
    rows.append(bvec(bh, JP))
    while len(rows) % 8:
        rows.append(jnp.zeros((BW,), jnp.float32))
    biases = jnp.stack(rows, axis=0)                               # (8, BW) f32

    return w_emb, w_conv, w_1x1, w_head, biases


# --------------------------------------------------------------------------
# Forward wrapper.
# --------------------------------------------------------------------------
def fuse_views_mht_forward(pos_2d, packed):
    """Eval-mode forward of fuse_views_mht (USE_MFT=False path).

    pos_2d: (B, T, V, C, N) float32
    returns (out, [f_fuse_before])
      out:            (B, T', num_joints, 3, N)
      f_fuse_before:  (B, TRANSFORM_DIM, NUM_CHANNELS//TRANSFORM_DIM, T, N)
    """
    w_emb, w_conv, w_1x1, w_head, biases = packed
    B, T, V, Cin, N = pos_2d.shape
    C = NUM_CHANNELS
    J3 = NUM_JOINTS * 3
    BN = B * N

    L = w_1x1.shape[0]
    SC = w_1x1.shape[1]
    S = SC // C                            # samples packed into lanes
    KP = w_emb.shape[0] // S
    JP = w_head.shape[1] // S
    assert BN % S == 0, "batch*views must be divisible by the lane-pack size"
    G = BN // S                            # groups row-stacked along time axis
    GRID = 1                               # single step: all samples share matmuls

    tp = T - 2
    for i in range(L):
        tp -= 2 * 3 ** (i + 1)
    assert tp >= 1, "temporal length too small for the dilated trunk"

    # (B, T, V, C, N) -> (B*N, T, V*Cin): matches PyTorch x.view(B*N, T, -1).
    x = jnp.transpose(pos_2d, (0, 4, 1, 2, 3)).reshape(BN, T, V * Cin)
    # pad per-sample features to KP, pack S samples into lanes, G groups into rows
    x = jnp.pad(x, ((0, 0), (0, 0), (0, KP - V * Cin)))
    x = (x.reshape(GRID, G, S, T, KP).transpose(0, 1, 3, 2, 4)
          .reshape(GRID, G * T, S * KP))

    kernel = partial(_fuse_views_kernel, groups=G, t_len=T, layers=L)

    def full(a):
        return pl.BlockSpec(a.shape, lambda g, nd=a.ndim: (0,) * nd)

    f_pack, out_pack = pl.pallas_call(
        kernel,
        out_shape=(jax.ShapeDtypeStruct((GRID, G * T, SC), jnp.float32),
                   jax.ShapeDtypeStruct((GRID, G * tp, S * JP), jnp.float32)),
        grid_spec=pltpu.PrefetchScalarGridSpec(
            num_scalar_prefetch=0,
            grid=(GRID,),
            in_specs=[pl.BlockSpec((1, G * T, S * KP), lambda g: (g, 0, 0)),
                      full(w_emb), full(w_conv), full(w_1x1), full(w_head),
                      full(biases)],
            out_specs=[pl.BlockSpec((1, G * T, SC), lambda g: (g, 0, 0)),
                       pl.BlockSpec((1, G * tp, S * JP), lambda g: (g, 0, 0))],
        ),
        # single grid step -> megacore sharding / buffer counts are moot here
        compiler_params=pltpu.CompilerParams(dimension_semantics=("arbitrary",)),
    )(x, w_emb, w_conv, w_1x1, w_head, biases)

    # unpack rows (groups) and lanes (samples) -> (B*N, T, C) / (B*N, T', J3)
    f_flat = (f_pack.reshape(GRID, G, T, S, C).transpose(0, 1, 3, 2, 4)
              .reshape(BN, T, C))
    out_flat = (out_pack.reshape(GRID, G, tp, S, JP)[..., :J3]
                .transpose(0, 1, 3, 2, 4).reshape(BN, tp, J3))

    # Pose3dShrink_out epilogue: view(-1, N, T', J, 3).permute(0, 2, 3, 4, 1)
    out = out_flat.reshape(B, N, tp, NUM_JOINTS, 3).transpose(0, 2, 3, 4, 1)
    # f right after MHF, returned as f_fuse_before, shaped (B, d1, d2, T, N)
    f_fuse_before = (f_flat.reshape(B, N, T, C).transpose(0, 3, 2, 1)
                     .reshape(B, TRANSFORM_DIM, C // TRANSFORM_DIM, T, N))
    return out, [f_fuse_before]


# --------------------------------------------------------------------------
# Plain-JAX (f32) reference of the same math (sanity check).
# --------------------------------------------------------------------------
def _reference_forward(pos_2d, params):
    B, T, V, Cin, N = pos_2d.shape
    C = NUM_CHANNELS
    we, be, w1, b1, wa, ba, wb, bb, wh, bh = params
    x = jnp.transpose(pos_2d, (0, 4, 1, 2, 3)).reshape(B * N, T, V * Cin)
    f = jax.nn.relu(jnp.einsum('btk,kc->btc', x, we) + be)
    t = T
    t_out = t - 2
    h = jax.nn.relu(f[:, 0:t_out] @ w1[0] + f[:, 1:1 + t_out] @ w1[1]
                    + f[:, 2:2 + t_out] @ w1[2] + b1)
    t = t_out
    for i in range(NUM_SHRINK_LAYERS):
        d = 3 ** (i + 1)
        t_out = t - 2 * d
        res = h[:, d:t - d]
        g = jax.nn.relu(h[:, 0:t_out] @ wa[i, 0] + h[:, d:d + t_out] @ wa[i, 1]
                        + h[:, 2 * d:2 * d + t_out] @ wa[i, 2] + ba[i])
        g = jax.nn.relu(g @ wb[i] + bb[i])
        h = res + g
        t = t_out
    y = h @ wh + bh
    out = y.reshape(B, N, t, NUM_JOINTS, 3).transpose(0, 2, 3, 4, 1)
    f_fuse = (f.reshape(B, N, T, C).transpose(0, 3, 2, 1)
              .reshape(B, TRANSFORM_DIM, C // TRANSFORM_DIM, T, N))
    return out, f_fuse


def init_params(key):
    """Deterministic synthetic parameters; BatchNorm (eval) folded into convs."""
    C = NUM_CHANNELS
    VC = NUM_JOINTS * IN_COORD
    J3 = NUM_JOINTS * 3
    L = NUM_SHRINK_LAYERS
    ks = jax.random.split(key, 8)

    def bn_stats(k):
        g = 1.0 + 0.05 * jax.random.normal(jax.random.fold_in(k, 0), (C,), jnp.float32)
        b = 0.05 * jax.random.normal(jax.random.fold_in(k, 1), (C,), jnp.float32)
        m = 0.05 * jax.random.normal(jax.random.fold_in(k, 2), (C,), jnp.float32)
        v = 1.0 + 0.1 * jnp.abs(jax.random.normal(jax.random.fold_in(k, 3), (C,), jnp.float32))
        return g, b, m, v

    def fold(w, stats, eps=1e-5):
        g, b, m, v = stats
        s = g / jnp.sqrt(v + eps)          # per output-channel scale (last axis)
        return w * s, (b - m * s).reshape(1, C)

    we = 0.1 * jax.random.normal(ks[0], (VC, C), jnp.float32)
    be = 0.05 * jax.random.normal(ks[1], (1, C), jnp.float32)

    w1, b1 = fold(0.1 * jax.random.normal(ks[2], (3, C, C), jnp.float32), bn_stats(ks[3]))

    wa_l, ba_l, wb_l, bb_l = [], [], [], []
    for i in range(L):
        k = jax.random.fold_in(ks[4], i)
        wai, bai = fold(0.1 * jax.random.normal(jax.random.fold_in(k, 0), (3, C, C), jnp.float32),
                        bn_stats(jax.random.fold_in(k, 1)))
        wbi, bbi = fold(0.1 * jax.random.normal(jax.random.fold_in(k, 2), (C, C), jnp.float32),
                        bn_stats(jax.random.fold_in(k, 3)))
        wa_l.append(wai); ba_l.append(bai.reshape(1, 1, C))
        wb_l.append(wbi); bb_l.append(bbi.reshape(1, 1, C))
    wa = jnp.stack(wa_l, axis=0)                 # (L, 3, C, C)
    ba = jnp.concatenate(ba_l, axis=0)           # (L, 1, C)
    wb = jnp.stack(wb_l, axis=0)                 # (L, C, C)
    bb = jnp.concatenate(bb_l, axis=0)           # (L, 1, C)

    wh = 0.1 * jax.random.normal(ks[5], (C, J3), jnp.float32)
    bh = 0.05 * jax.random.normal(ks[6], (1, J3), jnp.float32)
    return (we, be, w1, b1, wa, ba, wb, bb, wh, bh)


if __name__ == "__main__":
    key = jax.random.PRNGKey(0)
    pk, wk = jax.random.split(key)

    B, N = 2, 4                                   # batch, camera views
    T, V, Cin = TEMPORAL_LEN, NUM_JOINTS, IN_COORD
    pos_2d = jax.random.normal(pk, (B, T, V, Cin, N), jnp.float32)
    params = init_params(wk)

    BN = B * N
    # S*C = 128 lanes (full lane tile); remaining BN//S groups are row-stacked
    # inside the single grid step, so every matmul covers all 8 samples.
    lane_group = 4 if BN % 4 == 0 else 1
    packed = pack_params(params, lane_group)      # one-time bf16 weight packing

    fwd = jax.jit(fuse_views_mht_forward)
    out, extras = fwd(pos_2d, packed)
    jax.block_until_ready(out)
    jax.block_until_ready(extras[0])

    assert out.shape == (B, 1, NUM_JOINTS, 3, N), out.shape
    assert extras[0].shape == (B, TRANSFORM_DIM, NUM_CHANNELS // TRANSFORM_DIM, T, N)

    # sanity check against a plain-JAX f32 reference; kernel matmuls are bf16,
    # so compare with a relative tolerance on the max error.
    ref_out, ref_f = _reference_forward(pos_2d, params)
    err_o = float(jnp.max(jnp.abs(out - ref_out)))
    err_f = float(jnp.max(jnp.abs(extras[0] - ref_f)))
    scale_o = 1.0 + float(jnp.max(jnp.abs(ref_out)))
    scale_f = 1.0 + float(jnp.max(jnp.abs(ref_f)))
    assert err_o < 4e-2 * scale_o and err_f < 4e-2 * scale_f, (err_o, err_f)

    print("KERNEL_OK")
</pallas_src>

<mosaic_0001>
module attributes {stable_mosaic.version = 11 : i64} {
  func.func @_fuse_views_kernel(%arg0: i32, %arg1: memref<1x54x256xf32, #tpu.memory_space<vmem>>, %arg2: memref<256x128xbf16, #tpu.memory_space<vmem>>, %arg3: memref<3x128x384xbf16, #tpu.memory_space<vmem>>, %arg4: memref<2x128x128xbf16, #tpu.memory_space<vmem>>, %arg5: memref<128x256xbf16, #tpu.memory_space<vmem>>, %arg6: memref<8x256xf32, #tpu.memory_space<vmem>>, %arg7: memref<1x54x128xf32, #tpu.memory_space<vmem>>, %arg8: memref<1x2x256xf32, #tpu.memory_space<vmem>>) attributes {dimension_semantics = [#tpu.dimension_semantics<arbitrary>], iteration_bounds = array<i64: 1>, scalar_prefetch = 0 : i64, scratch_operands = 0 : i64, tpu.core_type = #tpu.core_type<tc>, window_params = [{transform_indices = @transform_0, window_bounds = array<i64: 1, 54, 256>}, {pipeline_mode = #tpu.pipeline_mode<synchronous>, transform_indices = @transform_1, window_bounds = array<i64: 256, 128>}, {pipeline_mode = #tpu.pipeline_mode<synchronous>, transform_indices = @transform_2, window_bounds = array<i64: 3, 128, 384>}, {pipeline_mode = #tpu.pipeline_mode<synchronous>, transform_indices = @transform_3, window_bounds = array<i64: 2, 128, 128>}, {pipeline_mode = #tpu.pipeline_mode<synchronous>, transform_indices = @transform_4, window_bounds = array<i64: 128, 256>}, {pipeline_mode = #tpu.pipeline_mode<synchronous>, transform_indices = @transform_5, window_bounds = array<i64: 8, 256>}, {transform_indices = @transform_6, window_bounds = array<i64: 1, 54, 128>}, {transform_indices = @transform_7, window_bounds = array<i64: 1, 2, 256>}]} {
    %c0 = arith.constant 0 : index
    %c0_0 = arith.constant 0 : index
    %c0_1 = arith.constant 0 : index
    %0 = vector.load %arg1[%c0, %c0_0, %c0_1] : memref<1x54x256xf32, #tpu.memory_space<vmem>>, vector<1x54x256xf32>
    %1 = vector.shape_cast %0 : vector<1x54x256xf32> to vector<54x256xf32>
    %c0_2 = arith.constant 0 : index
    %c0_3 = arith.constant 0 : index
    %2 = vector.load %arg2[%c0_2, %c0_3] : memref<256x128xbf16, #tpu.memory_space<vmem>>, vector<256x128xbf16>
    %3 = arith.truncf %1 : vector<54x256xf32> to vector<54x256xbf16>
    %cst = arith.constant dense<0.000000e+00> : vector<54x128xf32>
    %4 = tpu.matmul %3, %2, %cst {dimension_numbers = #tpu.dot_dimension_numbers<[1], [0], [0], [1], [0, 0, 1, 1], [], []>} : vector<54x256xbf16>, vector<256x128xbf16>, vector<54x128xf32> -> vector<54x128xf32>
    %c0_4 = arith.constant 0 : index
    %c0_5 = arith.constant 0 : index
    %5 = vector.load %arg6[%c0_4, %c0_5] : memref<8x256xf32, #tpu.memory_space<vmem>>, vector<1x128xf32>
    %6 = vector.broadcast %5 : vector<1x128xf32> to vector<54x128xf32>
    %7 = arith.addf %4, %6 : vector<54x128xf32>
    %cst_6 = arith.constant 0.000000e+00 : f32
    %8 = vector.broadcast %cst_6 : f32 to vector<54x128xf32>
    %9 = arith.maximumf %7, %8 : vector<54x128xf32>
    %c0_7 = arith.constant 0 : index
    %c0_8 = arith.constant 0 : index
    %c0_9 = arith.constant 0 : index
    %10 = vector.load %arg7[%c0_7, %c0_8, %c0_9] : memref<1x54x128xf32, #tpu.memory_space<vmem>>, vector<1x54x128xf32>
    %11 = vector.shape_cast %10 : vector<1x54x128xf32> to vector<54x128xf32>
    %12 = vector.shape_cast %9 : vector<54x128xf32> to vector<1x54x128xf32>
    tpu.vector_store %arg7[%c0_7, %c0_8, %c0_9], %12 {strides = array<i32>} : memref<1x54x128xf32, #tpu.memory_space<vmem>>, vector<1x54x128xf32>,
    %c0_10 = arith.constant 0 : index
    %c0_11 = arith.constant 0 : index
    %c0_12 = arith.constant 0 : index
    %13 = vector.load %arg3[%c0_10, %c0_11, %c0_12] : memref<3x128x384xbf16, #tpu.memory_space<vmem>>, vector<1x128x384xbf16>
    %14 = vector.shape_cast %13 : vector<1x128x384xbf16> to vector<128x384xbf16>
    %15 = arith.truncf %9 : vector<54x128xf32> to vector<54x128xbf16>
    %cst_13 = arith.constant dense<0.000000e+00> : vector<54x384xf32>
    %16 = tpu.matmul %15, %14, %cst_13 {dimension_numbers = #tpu.dot_dimension_numbers<[1], [0], [0], [1], [0, 0, 1, 1], [], []>} : vector<54x128xbf16>, vector<128x384xbf16>, vector<54x384xf32> -> vector<54x384xf32>
    %17 = vector.extract_strided_slice %16 {offsets = [0, 0], sizes = [25, 128], strides = [1, 1]} : vector<54x384xf32> to vector<25x128xf32>
    %18 = vector.extract_strided_slice %16 {offsets = [1, 128], sizes = [25, 128], strides = [1, 1]} : vector<54x384xf32> to vector<25x128xf32>
    %19 = arith.addf %17, %18 : vector<25x128xf32>
    %20 = vector.extract_strided_slice %16 {offsets = [2, 256], sizes = [25, 128], strides = [1, 1]} : vector<54x384xf32> to vector<25x128xf32>
    %21 = arith.addf %19, %20 : vector<25x128xf32>
    %22 = vector.extract_strided_slice %16 {offsets = [27, 0], sizes = [25, 128], strides = [1, 1]} : vector<54x384xf32> to vector<25x128xf32>
    %23 = vector.extract_strided_slice %16 {offsets = [28, 128], sizes = [25, 128], strides = [1, 1]} : vector<54x384xf32> to vector<25x128xf32>
    %24 = arith.addf %22, %23 : vector<25x128xf32>
    %25 = vector.extract_strided_slice %16 {offsets = [29, 256], sizes = [25, 128], strides = [1, 1]} : vector<54x384xf32> to vector<25x128xf32>
    %26 = arith.addf %24, %25 : vector<25x128xf32>
    %27 = tpu.concatenate %21, %26 in 0 : vector<25x128xf32>, vector<25x128xf32> -> vector<50x128xf32>
    %c1 = arith.constant 1 : index
    %c0_14 = arith.constant 0 : index
    %28 = vector.load %arg6[%c1, %c0_14] : memref<8x256xf32, #tpu.memory_space<vmem>>, vector<1x128xf32>
    %29 = vector.broadcast %28 : vector<1x128xf32> to vector<50x128xf32>
    %30 = arith.addf %27, %29 : vector<50x128xf32>
    %cst_15 = arith.constant 0.000000e+00 : f32
    %31 = vector.broadcast %cst_15 : f32 to vector<50x128xf32>
    %32 = arith.maximumf %30, %31 : vector<50x128xf32>
    %c1_16 = arith.constant 1 : index
    %c0_17 = arith.constant 0 : index
    %c0_18 = arith.constant 0 : index
    %33 = vector.load %arg3[%c1_16, %c0_17, %c0_18] : memref<3x128x384xbf16, #tpu.memory_space<vmem>>, vector<1x128x384xbf16>
    %34 = vector.shape_cast %33 : vector<1x128x384xbf16> to vector<128x384xbf16>
    %35 = arith.truncf %32 : vector<50x128xf32> to vector<50x128xbf16>
    %cst_19 = arith.constant dense<0.000000e+00> : vector<50x384xf32>
    %36 = tpu.matmul %35, %34, %cst_19 {dimension_numbers = #tpu.dot_dimension_numbers<[1], [0], [0], [1], [0, 0, 1, 1], [], []>} : vector<50x128xbf16>, vector<128x384xbf16>, vector<50x384xf32> -> vector<50x384xf32>
    %37 = vector.extract_strided_slice %36 {offsets = [0, 0], sizes = [19, 128], strides = [1, 1]} : vector<50x384xf32> to vector<19x128xf32>
    %38 = vector.extract_strided_slice %36 {offsets = [3, 128], sizes = [19, 128], strides = [1, 1]} : vector<50x384xf32> to vector<19x128xf32>
    %39 = arith.addf %37, %38 : vector<19x128xf32>
    %40 = vector.extract_strided_slice %36 {offsets = [6, 256], sizes = [19, 128], strides = [1, 1]} : vector<50x384xf32> to vector<19x128xf32>
    %41 = arith.addf %39, %40 : vector<19x128xf32>
    %42 = vector.extract_strided_slice %36 {offsets = [25, 0], sizes = [19, 128], strides = [1, 1]} : vector<50x384xf32> to vector<19x128xf32>
    %43 = vector.extract_strided_slice %36 {offsets = [28, 128], sizes = [19, 128], strides = [1, 1]} : vector<50x384xf32> to vector<19x128xf32>
    %44 = arith.addf %42, %43 : vector<19x128xf32>
    %45 = vector.extract_strided_slice %36 {offsets = [31, 256], sizes = [19, 128], strides = [1, 1]} : vector<50x384xf32> to vector<19x128xf32>
    %46 = arith.addf %44, %45 : vector<19x128xf32>
    %47 = tpu.concatenate %41, %46 in 0 : vector<19x128xf32>, vector<19x128xf32> -> vector<38x128xf32>
    %c2 = arith.constant 2 : index
    %c0_20 = arith.constant 0 : index
    %48 = vector.load %arg6[%c2, %c0_20] : memref<8x256xf32, #tpu.memory_space<vmem>>, vector<1x128xf32>
    %49 = vector.broadcast %48 : vector<1x128xf32> to vector<38x128xf32>
    %50 = arith.addf %47, %49 : vector<38x128xf32>
    %cst_21 = arith.constant 0.000000e+00 : f32
    %51 = vector.broadcast %cst_21 : f32 to vector<38x128xf32>
    %52 = arith.maximumf %50, %51 : vector<38x128xf32>
    %c0_22 = arith.constant 0 : index
    %c0_23 = arith.constant 0 : index
    %c0_24 = arith.constant 0 : index
    %53 = vector.load %arg4[%c0_22, %c0_23, %c0_24] : memref<2x128x128xbf16, #tpu.memory_space<vmem>>, vector<1x128x128xbf16>
    %54 = vector.shape_cast %53 : vector<1x128x128xbf16> to vector<128x128xbf16>
    %55 = arith.truncf %52 : vector<38x128xf32> to vector<38x128xbf16>
    %cst_25 = arith.constant dense<0.000000e+00> : vector<38x128xf32>
    %56 = tpu.matmul %55, %54, %cst_25 {dimension_numbers = #tpu.dot_dimension_numbers<[1], [0], [0], [1], [0, 0, 1, 1], [], []>} : vector<38x128xbf16>, vector<128x128xbf16>, vector<38x128xf32> -> vector<38x128xf32>
    %c3 = arith.constant 3 : index
    %c0_26 = arith.constant 0 : index
    %57 = vector.load %arg6[%c3, %c0_26] : memref<8x256xf32, #tpu.memory_space<vmem>>, vector<1x128xf32>
    %58 = vector.broadcast %57 : vector<1x128xf32> to vector<38x128xf32>
    %59 = arith.addf %56, %58 : vector<38x128xf32>
    %cst_27 = arith.constant 0.000000e+00 : f32
    %60 = vector.broadcast %cst_27 : f32 to vector<38x128xf32>
    %61 = arith.maximumf %59, %60 : vector<38x128xf32>
    %62 = vector.extract_strided_slice %32 {offsets = [3, 0], sizes = [19, 128], strides = [1, 1]} : vector<50x128xf32> to vector<19x128xf32>
    %63 = vector.extract_strided_slice %32 {offsets = [28, 0], sizes = [19, 128], strides = [1, 1]} : vector<50x128xf32> to vector<19x128xf32>
    %64 = tpu.concatenate %62, %63 in 0 : vector<19x128xf32>, vector<19x128xf32> -> vector<38x128xf32>
    %65 = arith.addf %64, %61 : vector<38x128xf32>
    %c2_28 = arith.constant 2 : index
    %c0_29 = arith.constant 0 : index
    %c0_30 = arith.constant 0 : index
    %66 = vector.load %arg3[%c2_28, %c0_29, %c0_30] : memref<3x128x384xbf16, #tpu.memory_space<vmem>>, vector<1x128x384xbf16>
    %67 = vector.shape_cast %66 : vector<1x128x384xbf16> to vector<128x384xbf16>
    %68 = vector.extract_strided_slice %65 {offsets = [0, 0], sizes = [1, 128], strides = [1, 1]} : vector<38x128xf32> to vector<1x128xf32>
    %69 = vector.extract_strided_slice %65 {offsets = [9, 0], sizes = [1, 128], strides = [1, 1]} : vector<38x128xf32> to vector<1x128xf32>
    %70 = vector.extract_strided_slice %65 {offsets = [18, 0], sizes = [1, 128], strides = [1, 1]} : vector<38x128xf32> to vector<1x128xf32>
    %71 = vector.extract_strided_slice %65 {offsets = [19, 0], sizes = [1, 128], strides = [1, 1]} : vector<38x128xf32> to vector<1x128xf32>
    %72 = vector.extract_strided_slice %65 {offsets = [28, 0], sizes = [1, 128], strides = [1, 1]} : vector<38x128xf32> to vector<1x128xf32>
    %73 = vector.extract_strided_slice %65 {offsets = [37, 0], sizes = [1, 128], strides = [1, 1]} : vector<38x128xf32> to vector<1x128xf32>
    %74 = tpu.concatenate %68, %69, %70, %71, %72, %73 in 0 : vector<1x128xf32>, vector<1x128xf32>, vector<1x128xf32>, vector<1x128xf32>, vector<1x128xf32>, vector<1x128xf32> -> vector<6x128xf32>
    %75 = arith.truncf %74 : vector<6x128xf32> to vector<6x128xbf16>
    %cst_31 = arith.constant dense<0.000000e+00> : vector<6x384xf32>
    %76 = tpu.matmul %75, %67, %cst_31 {dimension_numbers = #tpu.dot_dimension_numbers<[1], [0], [0], [1], [0, 0, 1, 1], [], []>} : vector<6x128xbf16>, vector<128x384xbf16>, vector<6x384xf32> -> vector<6x384xf32>
    %77 = vector.extract_strided_slice %76 {offsets = [0, 0], sizes = [1, 128], strides = [1, 1]} : vector<6x384xf32> to vector<1x128xf32>
    %78 = vector.extract_strided_slice %76 {offsets = [1, 128], sizes = [1, 128], strides = [1, 1]} : vector<6x384xf32> to vector<1x128xf32>
    %79 = arith.addf %77, %78 : vector<1x128xf32>
    %80 = vector.extract_strided_slice %76 {offsets = [2, 256], sizes = [1, 128], strides = [1, 1]} : vector<6x384xf32> to vector<1x128xf32>
    %81 = arith.addf %79, %80 : vector<1x128xf32>
    %82 = vector.extract_strided_slice %76 {offsets = [3, 0], sizes = [1, 128], strides = [1, 1]} : vector<6x384xf32> to vector<1x128xf32>
    %83 = vector.extract_strided_slice %76 {offsets = [4, 128], sizes = [1, 128], strides = [1, 1]} : vector<6x384xf32> to vector<1x128xf32>
    %84 = arith.addf %82, %83 : vector<1x128xf32>
    %85 = vector.extract_strided_slice %76 {offsets = [5, 256], sizes = [1, 128], strides = [1, 1]} : vector<6x384xf32> to vector<1x128xf32>
    %86 = arith.addf %84, %85 : vector<1x128xf32>
    %87 = tpu.concatenate %81, %86 in 0 : vector<1x128xf32>, vector<1x128xf32> -> vector<2x128xf32>
    %c4 = arith.constant 4 : index
    %c0_32 = arith.constant 0 : index
    %88 = vector.load %arg6[%c4, %c0_32] : memref<8x256xf32, #tpu.memory_space<vmem>>, vector<1x128xf32>
    %89 = vector.broadcast %88 : vector<1x128xf32> to vector<2x128xf32>
    %90 = arith.addf %87, %89 : vector<2x128xf32>
    %cst_33 = arith.constant 0.000000e+00 : f32
    %91 = vector.broadcast %cst_33 : f32 to vector<2x128xf32>
    %92 = arith.maximumf %90, %91 : vector<2x128xf32>
    %c1_34 = arith.constant 1 : index
    %c0_35 = arith.constant 0 : index
    %c0_36 = arith.constant 0 : index
    %93 = vector.load %arg4[%c1_34, %c0_35, %c0_36] : memref<2x128x128xbf16, #tpu.memory_space<vmem>>, vector<1x128x128xbf16>
    %94 = vector.shape_cast %93 : vector<1x128x128xbf16> to vector<128x128xbf16>
    %95 = arith.truncf %92 : vector<2x128xf32> to vector<2x128xbf16>
    %cst_37 = arith.constant dense<0.000000e+00> : vector<2x128xf32>
    %96 = tpu.matmul %95, %94, %cst_37 {dimension_numbers = #tpu.dot_dimension_numbers<[1], [0], [0], [1], [0, 0, 1, 1], [], []>} : vector<2x128xbf16>, vector<128x128xbf16>, vector<2x128xf32> -> vector<2x128xf32>
    %c5 = arith.constant 5 : index
    %c0_38 = arith.constant 0 : index
    %97 = vector.load %arg6[%c5, %c0_38] : memref<8x256xf32, #tpu.memory_space<vmem>>, vector<1x128xf32>
    %98 = vector.broadcast %97 : vector<1x128xf32> to vector<2x128xf32>
    %99 = arith.addf %96, %98 : vector<2x128xf32>
    %cst_39 = arith.constant 0.000000e+00 : f32
    %100 = vector.broadcast %cst_39 : f32 to vector<2x128xf32>
    %101 = arith.maximumf %99, %100 : vector<2x128xf32>
    %102 = vector.extract_strided_slice %65 {offsets = [9, 0], sizes = [1, 128], strides = [1, 1]} : vector<38x128xf32> to vector<1x128xf32>
    %103 = vector.extract_strided_slice %65 {offsets = [28, 0], sizes = [1, 128], strides = [1, 1]} : vector<38x128xf32> to vector<1x128xf32>
    %104 = tpu.concatenate %102, %103 in 0 : vector<1x128xf32>, vector<1x128xf32> -> vector<2x128xf32>
    %105 = arith.addf %104, %101 : vector<2x128xf32>
    %c0_40 = arith.constant 0 : index
    %c0_41 = arith.constant 0 : index
    %106 = vector.load %arg5[%c0_40, %c0_41] : memref<128x256xbf16, #tpu.memory_space<vmem>>, vector<128x256xbf16>
    %107 = arith.truncf %105 : vector<2x128xf32> to vector<2x128xbf16>
    %cst_42 = arith.constant dense<0.000000e+00> : vector<2x256xf32>
    %108 = tpu.matmul %107, %106, %cst_42 {dimension_numbers = #tpu.dot_dimension_numbers<[1], [0], [0], [1], [0, 0, 1, 1], [], []>} : vector<2x128xbf16>, vector<128x256xbf16>, vector<2x256xf32> -> vector<2x256xf32>
    %c6 = arith.constant 6 : index
    %c0_43 = arith.constant 0 : index
    %109 = vector.load %arg6[%c6, %c0_43] : memref<8x256xf32, #tpu.memory_space<vmem>>, vector<1x256xf32>
    %110 = vector.broadcast %109 : vector<1x256xf32> to vector<2x256xf32>
    %111 = arith.addf %108, %110 : vector<2x256xf32>
    %c0_44 = arith.constant 0 : index
    %c0_45 = arith.constant 0 : index
    %c0_46 = arith.constant 0 : index
    %112 = vector.load %arg8[%c0_44, %c0_45, %c0_46] : memref<1x2x256xf32, #tpu.memory_space<vmem>>, vector<1x2x256xf32>
    %113 = vector.shape_cast %112 : vector<1x2x256xf32> to vector<2x256xf32>
    %114 = vector.shape_cast %111 : vector<2x256xf32> to vector<1x2x256xf32>
    tpu.vector_store %arg8[%c0_44, %c0_45, %c0_46], %114 {strides = array<i32>} : memref<1x2x256xf32, #tpu.memory_space<vmem>>, vector<1x2x256xf32>,
    return
  }
  func.func @transform_0(%arg0: i32) -> (i32, i32, i32) {
    %c0_i32 = arith.constant 0 : i32
    %c0_i32_0 = arith.constant 0 : i32
    %c0_i32_1 = arith.constant 0 : i32
    return %arg0, %c0_i32, %c0_i32_0 : i32, i32, i32
  }
  func.func @transform_1(%arg0: i32) -> (i32, i32) {
    %c0_i32 = arith.constant 0 : i32
    %c0_i32_0 = arith.constant 0 : i32
    %c0_i32_1 = arith.constant 0 : i32
    return %c0_i32, %c0_i32_0 : i32, i32
  }
  func.func @transform_2(%arg0: i32) -> (i32, i32, i32) {
    %c0_i32 = arith.constant 0 : i32
    %c0_i32_0 = arith.constant 0 : i32
    %c0_i32_1 = arith.constant 0 : i32
    %c0_i32_2 = arith.constant 0 : i32
    return %c0_i32, %c0_i32_0, %c0_i32_1 : i32, i32, i32
  }
  func.func @transform_3(%arg0: i32) -> (i32, i32, i32) {
    %c0_i32 = arith.constant 0 : i32
    %c0_i32_0 = arith.constant 0 : i32
    %c0_i32_1 = arith.constant 0 : i32
    %c0_i32_2 = arith.constant 0 : i32
    return %c0_i32, %c0_i32_0, %c0_i32_1 : i32, i32, i32
  }
  func.func @transform_4(%arg0: i32) -> (i32, i32) {
    %c0_i32 = arith.constant 0 : i32
    %c0_i32_0 = arith.constant 0 : i32
    %c0_i32_1 = arith.constant 0 : i32
    return %c0_i32, %c0_i32_0 : i32, i32
  }
  func.func @transform_5(%arg0: i32) -> (i32, i32) {
    %c0_i32 = arith.constant 0 : i32
    %c0_i32_0 = arith.constant 0 : i32
    %c0_i32_1 = arith.constant 0 : i32
    return %c0_i32, %c0_i32_0 : i32, i32
  }
  func.func @transform_6(%arg0: i32) -> (i32, i32, i32) {
    %c0_i32 = arith.constant 0 : i32
    %c0_i32_0 = arith.constant 0 : i32
    %c0_i32_1 = arith.constant 0 : i32
    return %arg0, %c0_i32, %c0_i32_0 : i32, i32, i32
  }
  func.func @transform_7(%arg0: i32) -> (i32, i32, i32) {
    %c0_i32 = arith.constant 0 : i32
    %c0_i32_0 = arith.constant 0 : i32
    %c0_i32_1 = arith.constant 0 : i32
    return %arg0, %c0_i32, %c0_i32_0 : i32, i32, i32
  }
}

</mosaic_0001>

<bundles_post_ra>
// kernel: fuse_views_mht_forward.1
= control target key start
LH: loop header
LB: loop body
LE: loop exit
PB: predicated region body
PF: predicated region fallthrough
CT: control target
= control target key end

     0   :  { %v2318_v61 = vmov 0   ;;  %vm558_vm0 = vcmask 1046528   ;;  %vm578_vm1 = vcmask 1045504   ;;  %vm961_vm2 = vcmask 1044480   ;;  %s2920_s1 = inlined_call_operand.vmem [shape: bf16[256,128], index: 1, kind: input, shape index: {}]   ;;  %s2921_s0 = inlined_call_operand.vmem [shape: f32[1,54,256], index: 0, kind: input, shape index: {}]   ;;  %s2922_s2 = inlined_call_operand.vmem [shape: bf16[3,128,384], index: 2, kind: input, shape index: {}]   ;;  %s2923_s5 = inlined_call_operand.vmem [shape: f32[8,256], index: 5, kind: input, shape index: {}]   ;;  %s2924_s6 = inlined_call_operand.vmem [shape: f32[1,54,128], index: 6, kind: output, shape index: {0}]   ;;  %s2925_s3 = inlined_call_operand.vmem [shape: bf16[2,128,128], index: 3, kind: input, shape index: {}]   ;;  %s2926_s4 = inlined_call_operand.vmem [shape: bf16[128,256], index: 4, kind: input, shape index: {}]   ;;  %s2927_s7 = inlined_call_operand.vmem [shape: f32[1,2,256], index: 7, kind: output, shape index: {1}]  }
   0x1   :  { %v2166_v0 = vld [vmem:[%s2920_s1 + $0x40] sm:$0xff]   ;;  %v2168_v2 = vld [vmem:[%s2920_s1 + $0x48] sm:$0xff]   ;;  %v2170_v4 = vld [vmem:[%s2920_s1 + $0x50] sm:$0xff]   ;;  %451 = vmatprep.mubr.bf16.mxu1 %v2318_v61  ;;  %vm643_vm3 = vcmask 1040384   ;;  %vm1031_vm4 = vcmask 1042432   ;;  %vm2320_vm5 = vmmov 0  }
   0x2   :  { %v2167_v1 = vld [vmem:[%s2920_s1] sm:$0xff]   ;;  %1954 = vmatprep.subr.bf16.mxu0 %v2166_v0  ;;  %v2169_v3 = vld [vmem:[%s2920_s1 + $0x8] sm:$0xff]   ;;  %v2171_v5 = vld [vmem:[%s2920_s1 + $0x10] sm:$0xff]   ;;  %vm977_vm6 = vcmask 1041408   ;;  %vm1237_vm7 = vcmask 1043456  }
   0x3   :  { %1955 = vmatpush3.bf16.msra.mxu0 %v2167_v1  ;;  %v2172_v6 = vld [vmem:[%s2920_s1 + $0x58] sm:$0xff]   ;;  %v2174_v8 = vld [vmem:[%s2920_s1 + $0x60] sm:$0xff]   ;;  %v2176_v10 = vld [vmem:[%s2920_s1 + $0x68] sm:$0xff]  }
   0x4   :  { %1956 = vmatprep.subr.bf16.mxu0 %v2168_v2  ;;  %v2173_v7 = vld [vmem:[%s2920_s1 + $0x18] sm:$0xff]   ;;  %v2175_v9 = vld [vmem:[%s2920_s1 + $0x20] sm:$0xff]   ;;  %v27_v11 = vld [vmem:[%s2921_s0 + $0x8] sm:$0xff] }
   0x5   :  { %v29_v12 = vld [vmem:[%s2921_s0 + $0x18] sm:$0xff]  ;;  %v2177_v14 = vld [vmem:[%s2920_s1 + $0x28] sm:$0xff]   ;;  %v2178_v15 = vld [vmem:[%s2920_s1 + $0x70] sm:$0xff]  }
   0x6   :  { %v73_v13 = vpack.c.bf16 %v29_v12, %v27_v11  ;;  %v2179_v16 = vld [vmem:[%s2920_s1 + $0x30] sm:$0xff]   ;;  %v2184_v18 = vld [vmem:[%s2922_s2] ss:$12 sps:$4 sm:$0xff]   ;;  %v2185_v19 = vld [vmem:[%s2922_s2 + $0x1c] ss:$12 sps:$4 sm:$0xff]  }
   0x7   :  { %1957 = vmatpush3.bf16.msra.mxu0 %v2169_v3  ;;  %v2182_v17 = vld [vmem:[%s2922_s2 + $0x4] ss:$12 sps:$4 sm:$0xff]   ;;  %v2180_v20 = vld [vmem:[%s2920_s1 + $0x78] sm:$0xff]   ;;  %v2188_v25 = vld [vmem:[%s2922_s2 + $0x34] ss:$12 sps:$4 sm:$0xff]  }
   0x8   :  { %1958 = vmatprep.subr.bf16.mxu0 %v2170_v4  ;;  %209 = vmatprep.mubr.bf16.mxu0 %v73_v13  ;;  %v2187_v21 = vld [vmem:[%s2922_s2 + $0x18] ss:$12 sps:$4 sm:$0xff]   ;;  %v28_v24 = vld [vmem:[%s2921_s0 + $0x10] sm:$0xff]  ;;  %v31_v26 = vld [vmem:[%s2921_s0 + $0x28] sm:$0xff] }
   0x9   :  { %419 = vmatprep.subr.bf16.mxu1 %v2182_v17  ;;  %v2181_v22 = vld [vmem:[%s2920_s1 + $0x38] sm:$0xff]   ;;  %v26_v23 = vld [vmem:[%s2921_s0] sm:$0xff]  ;;  %v2190_v28 = vld [vmem:[%s2922_s2 + $0x8] ss:$12 sps:$4 sm:$0xff]  }
   0xa   :  { %420 = vmatpush1.bf16.msra.mxu1 %v2184_v18  ;;  %v33_v27 = vld [vmem:[%s2921_s0 + $0x38] sm:$0xff]  ;;  %v72_v31 = vpack.c.bf16 %v28_v24, %v26_v23  ;;  %v2194_v32 = vld [vmem:[%s2922_s2 + $0x20] ss:$12 sps:$4 sm:$0xff]   ;;  %v2195_v33 = vld [vmem:[%s2922_s2 + $0x48] ss:$12 sps:$4 sm:$0xff]  }
   0xb   :  { %1959 = vmatpush3.bf16.msra.mxu0 %v2171_v5  ;;  %421 = vmatprep.subr.bf16.mxu1 %v2185_v19  ;;  %v2191_v29 = vld [vmem:[%s2922_s2 + $0x30] ss:$12 sps:$4 sm:$0xff]   ;;  %v2192_v30 = vld [vmem:[%s2922_s2 + $0x4c] ss:$12 sps:$4 sm:$0xff]   ;;  %v75_v34 = vpack.c.bf16 %v33_v27, %v31_v26  ;;  %v30_v36 = vld [vmem:[%s2921_s0 + $0x20] sm:$0xff] }
   0xc   :  { %1960 = vmatprep.subr.bf16.mxu0 %v2172_v6  ;;  %v2196_v35 = vld [vmem:[%s2922_s2 + $0x64] ss:$12 sps:$4 sm:$0xff]   ;;  %v35_v38 = vld [vmem:[%s2921_s0 + $0x48] sm:$0xff]  ;;  %v37_v39 = vld [vmem:[%s2921_s0 + $0x58] sm:$0xff] }
   0xd   :  { %v32_v37 = vld [vmem:[%s2921_s0 + $0x30] sm:$0xff]  ;;  %v2198_v40 = vld [vmem:[%s2922_s2 + $0x38] ss:$12 sps:$4 sm:$0xff]   ;;  %v2199_v41 = vld [vmem:[%s2922_s2 + $0x60] ss:$12 sps:$4 sm:$0xff]   ;;  %v77_v43 = vpack.c.bf16 %v37_v39, %v35_v38 }
   0xe   :  { %422 = vmatpush1.bf16.msra.mxu1 %v2187_v21  ;;  %v74_v42 = vpack.c.bf16 %v32_v37, %v30_v36  ;;  %v34_v44 = vld [vmem:[%s2921_s0 + $0x40] sm:$0xff]  ;;  %v36_v45 = vld [vmem:[%s2921_s0 + $0x50] sm:$0xff]  ;;  %v39_v46 = vld [vmem:[%s2921_s0 + $0x68] sm:$0x3f] }
   0xf   :  { %1961 = vmatpush3.bf16.msra.mxu0 %v2173_v7  ;;  %423 = vmatprep.subr.bf16.mxu1 %v2188_v25  ;;  %v76_v47 = vpack.c.bf16 %v36_v45, %v34_v44  ;;  %v79_v48 = vpack.c.bf16 %v39_v46, %v39_v46  ;;  %v38_v49 = vld [vmem:[%s2921_s0 + $0x60] sm:$0x3f]  ;;  %v2200_v51 = vld [vmem:[%s2922_s2 + $0x7c] ss:$12 sps:$4 sm:$0xff]   ;;  %v2208_v57 = vld [vmem:[%s2922_s2 + $0xac] ss:$12 sps:$4 sm:$0xff]  }
  0x10   :  { %1962 = vmatprep.subr.bf16.mxu0 %v2174_v8  ;;  %v78_v50 = vpack.c.bf16 %v38_v49, %v38_v49  ;;  %v2202_v52 = vld [vmem:[%s2922_s2 + $0x50] ss:$12 sps:$4 sm:$0xff]   ;;  %v2203_v53 = vld [vmem:[%s2922_s2 + $0x78] ss:$12 sps:$4 sm:$0xff]   ;;  %v2204_v54 = vld [vmem:[%s2922_s2 + $0x94] ss:$12 sps:$4 sm:$0xff]  }
  0x11   :  { %v2206_v55 = vld [vmem:[%s2922_s2 + $0x68] ss:$12 sps:$4 sm:$0xff]   ;;  %v2207_v56 = vld [vmem:[%s2922_s2 + $0x90] ss:$12 sps:$4 sm:$0xff]   ;;  %v2210_v58 = vld [vmem:[%s2922_s2 + $0x80] ss:$12 sps:$4 sm:$0xff]  }
  0x12   :  { %424 = vmatpush1.bf16.msra.mxu1 %v2191_v29  ;;  %v2211_v59 = vld [vmem:[%s2922_s2 + $0xa8] ss:$12 sps:$4 sm:$0xff]   ;;  %v2212_v60 = vld [vmem:[%s2922_s2 + $0x98] ss:$12 sps:$4 sm:$0xff]   ;;  %v2213_v62 = vld [vmem:[%s2922_s2 + $0xb0] ss:$12 sps:$4 sm:$0xff]  }
  0x13   :  { %1963 = vmatpush3.bf16.msra.mxu0 %v2175_v9  ;;  %425 = vmatprep.subr.bf16.mxu1 %v2192_v30  ;;  %v2216_v63 = vld [vmem:[%s2922_s2 + $0xc4] ss:$12 sps:$4 sm:$0xff]   ;;  %v80_v1 = vld [vmem:[%s2923_s5] ss:$0 sm:$0xff]  ;;  %v2219_v17 = vld [vmem:[%s2922_s2 + $0xdc] ss:$12 sps:$4 sm:$0xff]  }
  0x14   :  { %1964 = vmatprep.subr.bf16.mxu0 %v2176_v10  ;;  %v2214_v13 = vld [vmem:[%s2922_s2 + $0xc0] ss:$12 sps:$4 sm:$0xff]   ;;  %v2217_v21 = vld [vmem:[%s2922_s2 + $0xd8] ss:$12 sps:$4 sm:$0xff]  }
  0x15   :  { %v2222_v24 = vld [vmem:[%s2922_s2 + $0xf4] ss:$12 sps:$4 sm:$0xff]   ;;  %v2228_v49 = vld [vmem:[%s2922_s2 + $0x124] ss:$12 sps:$4 sm:$0xff]  }
  0x16   :  { %426 = vmatpush1.bf16.msra.mxu1 %v2195_v33 }
  0x17   :  { %1965 = vmatpush3.bf16.msra.mxu0 %v2177_v14  ;;  %427 = vmatprep.subr.bf16.mxu1 %v2196_v35 }
  0x18   :  { %1966 = vmatprep.subr.bf16.mxu0 %v2178_v15 }
  0x1a   :  { %428 = vmatpush1.bf16.msra.mxu1 %v2199_v41 }
  0x1b   :  { %1967 = vmatpush3.bf16.msra.mxu0 %v2179_v16  ;;  %429 = vmatprep.subr.bf16.mxu1 %v2200_v51  ;;  %v2229_v51 = vld [vmem:[%s2922_s2 + $0xc8] ss:$12 sps:$4 sm:$0xff]  }
  0x1c   :  { %1968 = vmatprep.subr.bf16.mxu0 %v2180_v20 }
  0x1e   :  { %430 = vmatpush1.bf16.msra.mxu1 %v2203_v53  ;;  %v2230_v53 = vld [vmem:[%s2922_s2 + $0x138] ss:$12 sps:$4 sm:$0xff]  }
  0x1f   :  { %1969 = vmatpush3.bf16.msra.mxu0 %v2181_v22  ;;  %431 = vmatprep.subr.bf16.mxu1 %v2204_v54  ;;  %v2233_v54 = vld [vmem:[%s2922_s2 + $0xe0] ss:$12 sps:$4 sm:$0xff]  }
  0x20   :  { %2047 = vmatprep.subr.bf16.mxu0 %v2190_v28 }
  0x22   :  { %210 = vmatmul.mubr.bf16.vlgmr.msra.gmra.mrb[0].mxu0 %v72_v31  ;;  %432 = vmatpush1.bf16.msra.mxu1 %v2207_v56  ;;  %v2234_v56 = vld [vmem:[%s2922_s2 + $0x150] ss:$12 sps:$4 sm:$0xff]  }
  0x23   :  { %217 = vmatprep.mubr.bf16.mxu0 %v75_v34  ;;  %2048 = vmatpush3.bf16.msra.mxu0 %v2190_v28  ;;  %v2220_v28 = vld [vmem:[%s2922_s2 + $0xf0] ss:$12 sps:$4 sm:$0xff]  }
  0x24   :  { %2049 = vmatprep.subr.bf16.mxu0 %v2194_v32  ;;  %433 = vmatprep.subr.bf16.mxu1 %v2208_v57  ;;  %v2237_v57 = vld [vmem:[%s2922_s2 + $0xf8] ss:$12 sps:$4 sm:$0xff]  }
  0x26   :  { %434 = vmatpush1.bf16.msra.mxu1 %v2211_v59  ;;  %v2238_v59 = vld [vmem:[%s2922_s2 + $0x168] ss:$12 sps:$4 sm:$0xff]  }
  0x27   :  { %2050 = vmatpush3.bf16.msra.mxu0 %v2194_v32  ;;  %825 = vmatprep.subr.bf16.mxu1 %v2216_v63  ;;  %v2243_v63 = vld [vmem:[%s2922_s2 + $0x140] ss:$12 sps:$4 sm:$0xff]  }
  0x28   :  { %2051 = vmatprep.subr.bf16.mxu0 %v2198_v40 }
  0x2a   :  { %218 = vmatmul.mubr.bf16.gmra.mrb[4].mxu0 %v74_v42 }
  0x2b   :  { %225 = vmatprep.mubr.bf16.mxu0 %v77_v43  ;;  %2052 = vmatpush3.bf16.msra.mxu0 %v2198_v40 }
  0x2c   :  { %2053 = vmatprep.subr.bf16.mxu0 %v2202_v52 }
  0x2f   :  { %2054 = vmatpush3.bf16.msra.mxu0 %v2202_v52  ;;  %v2232_v52 = vld [vmem:[%s2922_s2 + $0x13c] ss:$12 sps:$4 sm:$0xff]  }
  0x30   :  { %2055 = vmatprep.subr.bf16.mxu0 %v2206_v55 }
  0x32   :  { %226 = vmatmul.mubr.bf16.gmra.mrb[8].mxu0 %v76_v47  ;;  %v2225_v47 = vld [vmem:[%s2922_s2 + $0x10c] ss:$12 sps:$4 sm:$0xff]  }
  0x33   :  { %233 = vmatprep.mubr.bf16.mxu0 %v79_v48  ;;  %2056 = vmatpush3.bf16.msra.mxu0 %v2206_v55  ;;  %v2223_v48 = vld [vmem:[%s2922_s2 + $0x108] ss:$12 sps:$4 sm:$0xff]  }
  0x34   :  { %2057 = vmatprep.subr.bf16.mxu0 %v2210_v58  ;;  %v2236_v55 = vld [vmem:[%s2922_s2 + $0x154] ss:$12 sps:$4 sm:$0xff]  }
  0x37   :  { %2058 = vmatpush3.bf16.msra.mxu0 %v2210_v58  ;;  %v2240_v58 = vld [vmem:[%s2922_s2 + $0x16c] ss:$12 sps:$4 sm:$0xff]  }
  0x38   :  { %2059 = vmatprep.subr.bf16.mxu0 %v2212_v60 }
  0x3a   :  { %234 = vmatmul.mubr.bf16.gmra.mrb[12].mxu0 %v78_v50  ;;  %v2226_v50 = vld [vmem:[%s2922_s2 + $0x120] ss:$12 sps:$4 sm:$0xff]  }
  0x3b   :  { %2060 = vmatpush3.bf16.msra.mxu0 %v2212_v60  ;;  %v2241_v60 = vld [vmem:[%s2922_s2 + $0x110] ss:$12 sps:$4 sm:$0xff]  }
  0x3c   :  { %2061 = vmatprep.subr.bf16.mxu0 %v2213_v62 }
  0x3f   :  { %2062 = vmatpush3.bf16.msra.mxu0 %v2213_v62  ;;  %v2242_v62 = vld [vmem:[%s2922_s2 + $0x128] ss:$12 sps:$4 sm:$0xff]  }
  0x40   :  { %2071 = vmatprep.subr.bf16.mxu0 %v2229_v51 }
  0xf5   :  { %v1970_v0 = vpop.f32.mrb[0].mxu0 }
  0xf6   :  { %v1971_v2 = vpop.f32.mrb[1].mxu0 }
  0xf7   :  { %v1972_v3 = vadd.f32 %v1971_v2, %v1970_v0  ;;  %v1973_v4 = vpop.f32.mrb[2].mxu0  ;;  %v2244_v0 = vld [vmem:[%s2922_s2 + $0x158] ss:$12 sps:$4 sm:$0xff]  }
  0xf8   :  { %v1974_v5 = vpop.f32.mrb[3].mxu0 }
  0xf9   :  { %v212_v6 = vadd.f32 %v1972_v3, %v80_v1  ;;  %v1975_v7 = vadd.f32 %v1974_v5, %v1973_v4 }
  0xfb   :  { %v241_v8 = vmax.f32 %v212_v6, 0.0  ;;  %v215_v9 = vadd.f32 %v1975_v7, %v80_v1 }
  0xfd   :  { %248 = vst [vmem:[%s2924_s6] sm:$0xff] %v241_v8  ;;  %v242_v10 = vmax.f32 %v215_v9, 0.0  ;;  %v1976_v11 = vpop.f32.mrb[4].mxu0 }
  0xfe   :  { %v1977_v12 = vpop.f32.mrb[5].mxu0 }
  0xff   :  { %249 = vst [vmem:[%s2924_s6 + $0x8] sm:$0xff] %v242_v10  ;;  %v1978_v14 = vadd.f32 %v1977_v12, %v1976_v11  ;;  %v1979_v15 = vpop.f32.mrb[6].mxu0  ;;  %v287_v16 = vpack.c.bf16 %v242_v10, %v241_v8 }
 0x100   :  { %v1980_v18 = vpop.f32.mrb[7].mxu0 }
 0x101   :  { %v220_v19 = vadd.f32 %v1978_v14, %v80_v1  ;;  %v1981_v20 = vadd.f32 %v1980_v18, %v1979_v15  ;;  %452 = vmatmul.mubr.bf16.vlgmr.msra.gmra.mrb[0].mxu1 %v287_v16  ;;  %2063 = vmatprep.mubr.bf16.mxu0 %v287_v16 }
 0x102   :  { %461 = vmatprep.mubr.bf16.mxu1 %v2318_v61  ;;  %826 = vmatpush1.bf16.msra.mxu1 %v2214_v13 }
 0x103   :  { %v243_v22 = vmax.f32 %v220_v19, 0.0  ;;  %v223_v23 = vadd.f32 %v1981_v20, %v80_v1  ;;  %827 = vmatprep.subr.bf16.mxu1 %v2219_v17 }
 0x105   :  { %250 = vst [vmem:[%s2924_s6 + $0x10] sm:$0xff] %v243_v22  ;;  %v244_v25 = vmax.f32 %v223_v23, 0.0  ;;  %v1982_v26 = vpop.f32.mrb[8].mxu0 }
 0x106   :  { %v1983_v27 = vpop.f32.mrb[9].mxu0  ;;  %828 = vmatpush1.bf16.msra.mxu1 %v2217_v21 }
 0x107   :  { %251 = vst [vmem:[%s2924_s6 + $0x18] sm:$0xff] %v244_v25  ;;  %v1984_v29 = vadd.f32 %v1983_v27, %v1982_v26  ;;  %v1985_v30 = vpop.f32.mrb[10].mxu0  ;;  %v288_v31 = vpack.c.bf16 %v244_v25, %v243_v22  ;;  %829 = vmatprep.subr.bf16.mxu1 %v2222_v24 }
 0x108   :  { %v1986_v32 = vpop.f32.mrb[11].mxu0 }
 0x109   :  { %v228_v33 = vadd.f32 %v1984_v29, %v80_v1  ;;  %v1987_v34 = vadd.f32 %v1986_v32, %v1985_v30  ;;  %462 = vmatmul.mubr.bf16.gmra.mrb[4].mxu1 %v288_v31  ;;  %2064 = vmatmul.mubr.bf16.vlgmr.msra.gmra.mrb[16].mxu0 %v288_v31  ;;  %v2633_v31 = vld [vmem:[%s2923_s5 + $0x1] ss:$0 sm:$0xff] }
 0x10a   :  { %471 = vmatprep.mubr.bf16.mxu1 %v2318_v61  ;;  %830 = vmatpush1.bf16.msra.mxu1 %v2220_v28 }
 0x10b   :  { %v245_v35 = vmax.f32 %v228_v33, 0.0  ;;  %v231_v36 = vadd.f32 %v1987_v34, %v80_v1  ;;  %831 = vmatprep.subr.bf16.mxu1 %v2225_v47  ;;  %2072 = vmatpush3.bf16.msra.mxu0 %v2229_v51 }
 0x10c   :  { %2073 = vmatprep.subr.bf16.mxu0 %v2233_v54 }
 0x10d   :  { %252 = vst [vmem:[%s2924_s6 + $0x20] sm:$0xff] %v245_v35  ;;  %v246_v37 = vmax.f32 %v231_v36, 0.0  ;;  %v1988_v38 = vpop.f32.mrb[12].mxu0 }
 0x10e   :  { %v1989_v39 = vpop.f32.mrb[13].mxu0  ;;  %832 = vmatpush1.bf16.msra.mxu1 %v2223_v48 }
 0x10f   :  { %253 = vst [vmem:[%s2924_s6 + $0x28] sm:$0xff] %v246_v37  ;;  %v1990_v40 = vadd.f32 %v1989_v39, %v1988_v38  ;;  %v1991_v41 = vpop.f32.mrb[14].mxu0  ;;  %v289_v42 = vpack.c.bf16 %v246_v37, %v245_v35  ;;  %833 = vmatprep.subr.bf16.mxu1 %v2228_v49  ;;  %2074 = vmatpush3.bf16.msra.mxu0 %v2233_v54 }
 0x110   :  { %v1992_v43 = vpop.f32.mrb[15].mxu0  ;;  %2075 = vmatprep.subr.bf16.mxu0 %v2237_v57 }
 0x111   :  { %v236_v44 = vadd.f32 %v1990_v40, %v80_v1  ;;  %472 = vmatmul.mubr.bf16.gmra.mrb[8].mxu1 %v289_v42  ;;  %2067 = vmatprep.mubr.bf16.mxu0 %v289_v42  ;;  %v2245_v1 = vld [vmem:[%s2922_s2 + $0x170] ss:$12 sps:$4 sm:$0xff]  }
 0x112   :  { %481 = vmatprep.mubr.bf16.mxu1 %v2318_v61  ;;  %834 = vmatpush1.bf16.msra.mxu1 %v2226_v50 }
 0x113   :  { %v247_v45 = vmax.f32 %v236_v44, 0.0  ;;  %835 = vmatprep.subr.bf16.mxu1 %v2232_v52  ;;  %2076 = vmatpush3.bf16.msra.mxu0 %v2237_v57 }
 0x114   :  { %2077 = vmatprep.subr.bf16.mxu0 %v2241_v60 }
 0x115   :  { %254 = vst [vmem:[%s2924_s6 + $0x30] sm:$0x3f] %v247_v45  ;;  %v290_v46 = vpack.c.bf16 %v247_v45, %v247_v45 }
 0x116   :  { %836 = vmatpush1.bf16.msra.mxu1 %v2230_v53 }
 0x117   :  { %2068 = vmatmul.mubr.bf16.gmra.mrb[20].mxu0 %v290_v46  ;;  %837 = vmatprep.subr.bf16.mxu1 %v2236_v55 }
 0x118   :  { %2078 = vmatpush3.bf16.msra.mxu0 %v2241_v60 }
 0x119   :  { %482 = vmatmul.mubr.bf16.gmra.mrb[12].mxu1 %v290_v46  ;;  %2079 = vmatprep.subr.bf16.mxu0 %v2242_v62 }
 0x11a   :  { %857 = vmatprep.mubr.bf16.mxu1 %v2318_v61  ;;  %838 = vmatpush1.bf16.msra.mxu1 %v2234_v56 }
 0x11b   :  { %839 = vmatprep.subr.bf16.mxu1 %v2240_v58 }
 0x11c   :  { %2080 = vmatpush3.bf16.msra.mxu0 %v2242_v62 }
 0x11d   :  { %2081 = vmatprep.subr.bf16.mxu0 %v2243_v63 }
 0x11e   :  { %840 = vmatpush1.bf16.msra.mxu1 %v2238_v59 }
 0x120   :  { %2082 = vmatpush3.bf16.msra.mxu0 %v2243_v63 }
 0x121   :  { %2083 = vmatprep.subr.bf16.mxu0 %v2244_v0 }
 0x124   :  { %2084 = vmatpush3.bf16.msra.mxu0 %v2244_v0 }
 0x125   :  { %2085 = vmatprep.subr.bf16.mxu0 %v2245_v1 }
 0x128   :  { %2086 = vmatpush3.bf16.msra.mxu0 %v2245_v1 }
 0x1d4   :  { %v453_v2 = vpop.f32.mrb[0].mxu1 }
 0x1d5   :  { %v455_v3 = vpop.f32.mrb[1].mxu1 }
 0x1d6   :  { %v457_v4 = vpop.f32.mrb[2].mxu1  ;;  %v559_v6 = vrot.slane %v455_v3, 1 }
 0x1d7   :  { %v459_v5 = vpop.f32.mrb[3].mxu1 }
 0x1d8   :  { %v560_v7 = vrot.slane %v459_v5, 1 }
 0x1da   :  { %v561_v8 = vsel %vm558_vm0, %v559_v6, %v560_v7 }
 0x1db   :  { %v570_v9 = vadd.f32 %v561_v8, %v453_v2 }
 0x1dc   :  { %v463_v10 = vpop.f32.mrb[4].mxu1  ;;  %v2065_v11 = vpop.f32.mrb[16].mxu0 }
 0x1dd   :  { %v465_v12 = vpop.f32.mrb[5].mxu1  ;;  %v524_v13 = vpop.f32.mrb[17].mxu0  ;;  %v582_v17 = vrot.slane %v2065_v11, 2 }
 0x1de   :  { %v562_v14 = vrot.slane %v465_v12, 1  ;;  %v467_v15 = vpop.f32.mrb[6].mxu1  ;;  %v2066_v16 = vpop.f32.mrb[18].mxu0  ;;  %v579_v22 = vrot.slane %v524_v13, 2 }
 0x1df   :  { %v584_v18 = vrot.slane %v2066_v16, 2  ;;  %v469_v19 = vpop.f32.mrb[7].mxu1  ;;  %v527_v20 = vpop.f32.mrb[19].mxu0 }
 0x1e0   :  { %v563_v21 = vsel %vm558_vm0, %v560_v7, %v562_v14  ;;  %v564_v23 = vrot.slane %v469_v19, 1  ;;  %v580_v24 = vrot.slane %v527_v20, 2 }
 0x1e1   :  { %v571_v25 = vadd.f32 %v563_v21, %v457_v4  ;;  %v585_v26 = vsel %vm578_vm1, %v582_v17, %v584_v18 }
 0x1e2   :  { %v565_v27 = vsel %vm558_vm0, %v562_v14, %v564_v23  ;;  %v573_v28 = vadd.f32 %v564_v23, %v467_v15  ;;  %v581_v29 = vsel %vm578_vm1, %v579_v22, %v580_v24  ;;  %v583_v30 = vsel %vm578_vm1, %v580_v24, %v582_v17 }
 0x1e3   :  { %v572_v32 = vadd.f32 %v565_v27, %v463_v10  ;;  %v590_v33 = vadd.f32 %v581_v29, %v570_v9  ;;  %v591_v34 = vadd.f32 %v583_v30, %v571_v25 }
 0x1e4   :  { %v593_v35 = vadd.f32 %v584_v18, %v573_v28  ;;  %v473_v36 = vpop.f32.mrb[8].mxu1 }
 0x1e5   :  { %v592_v37 = vadd.f32 %v585_v26, %v572_v32  ;;  %v646_v38 = vadd.f32 %v2633_v31, %v590_v33  ;;  %v647_v39 = vadd.f32 %v2633_v31, %v591_v34  ;;  %v475_v40 = vpop.f32.mrb[9].mxu1 }
 0x1e6   :  { %v597_v41 = vrot.slane %v475_v40, 1  ;;  %v477_v42 = vpop.f32.mrb[10].mxu1 }
 0x1e7   :  { %v653_v43 = vmax.f32 %v646_v38, 0.0  ;;  %v654_v44 = vmax.f32 %v647_v39, 0.0  ;;  %v479_v45 = vpop.f32.mrb[11].mxu1  ;;  %v648_v46 = vadd.f32 %v2633_v31, %v592_v37 }
 0x1e8   :  { %v598_v47 = vsel %vm558_vm0, %v564_v23, %v597_v41  ;;  %v599_v48 = vrot.slane %v479_v45, 1  ;;  %v2247_v45 = vld [vmem:[%s2925_s3 + $0x8] sm:$0xff]  }
 0x1e9   :  { %v693_v49 = vpack.c.bf16 %v654_v44, %v653_v43  ;;  %v607_v50 = vadd.f32 %v598_v47, %v467_v15  ;;  %v655_v51 = vmax.f32 %v648_v46, 0.0  ;;  %v1176_v52 = vrot.slane %v653_v43, 3  ;;  %v2246_v43 = vld [vmem:[%s2925_s3] sm:$0xff]   ;;  %v2248_v46 = vld [vmem:[%s2925_s3 + $0x10] sm:$0xff]   ;;  %v2249_v47 = vld [vmem:[%s2925_s3 + $0x18] sm:$0xff]  }
 0x1ea   :  { %v600_v53 = vsel %vm558_vm0, %v597_v41, %v599_v48  ;;  %v2069_v54 = vpop.f32.mrb[20].mxu0  ;;  %v1177_v55 = vrot.slane %v654_v44, 3  ;;  %v2319_v44 = vmov 0.0  }
 0x1eb   :  { %v608_v56 = vadd.f32 %v600_v53, %v473_v36  ;;  %v540_v57 = vpop.f32.mrb[21].mxu0  ;;  %858 = vmatmul.mubr.bf16.vlgmr.msra.gmra.mrb[16].mxu1 %v693_v49  ;;  %2087 = vmatprep.mubr.bf16.mxu0 %v693_v49  ;;  %v1179_v58 = vrot.slane %v655_v51, 3  ;;  %v618_v3 = vrot.slane %v2069_v54, 2  ;;  %v2251_v49 = vld [vmem:[%s2925_s3 + $0x28] sm:$0xff]   ;;  %v2256_v53 = vld [vmem:[%s2922_s2 + $0x184] ss:$12 sps:$4 sm:$0xff]  }
 0x1ec   :  { %v614_v59 = vrot.slane %v540_v57, 2  ;;  %v483_v60 = vpop.f32.mrb[12].mxu1  ;;  %v2070_v62 = vpop.f32.mrb[22].mxu0  ;;  %867 = vmatprep.mubr.bf16.mxu1 %v2318_v61  ;;  %v2642_v63 = vsel %vm961_vm2, %v1176_v52, %v1177_v55  ;;  %2095 = vmatprep.subr.bf16.mxu1 %v2319_v44  ;;  %v2254_v52 = vld [vmem:[%s2922_s2 + $0x180] ss:$12 sps:$4 sm:$0xff]  }
 0x1ed   :  { %v485_v0 = vpop.f32.mrb[13].mxu1  ;;  %v543_v1 = vpop.f32.mrb[23].mxu0  ;;  %v2645_v2 = vsel %vm961_vm2, %v1177_v55, %v1179_v58  ;;  %2096 = vmatpush3.bf16.msra.mxu1 %v2246_v43  ;;  %1369 = vmatprep.subr.bf16.mxu0 %v2256_v53 }
 0x1ee   :  { %v615_v4 = vsel %vm578_vm1, %v584_v18, %v614_v59  ;;  %v601_v5 = vrot.slane %v485_v0, 1  ;;  %v616_v6 = vrot.slane %v543_v1, 2  ;;  %v487_v7 = vpop.f32.mrb[14].mxu1  ;;  %2097 = vmatprep.subr.bf16.mxu1 %v2319_v44 }
 0x1ef   :  { %v624_v8 = vadd.f32 %v615_v4, %v607_v50  ;;  %v488_v9 = vpop.f32.mrb[15].mxu1  ;;  %v2252_v50 = vld [vmem:[%s2925_s3 + $0x30] sm:$0xff]  }
 0x1f0   :  { %v602_v10 = vsel %vm558_vm0, %v599_v48, %v601_v5  ;;  %v610_v11 = vadd.f32 %v601_v5, %v483_v60  ;;  %v617_v12 = vsel %vm578_vm1, %v614_v59, %v616_v6  ;;  %v619_v13 = vsel %vm578_vm1, %v616_v6, %v618_v3  ;;  %v2250_v48 = vld [vmem:[%s2925_s3 + $0x20] sm:$0xff]  }
 0x1f1   :  { %v609_v14 = vadd.f32 %v602_v10, %v477_v42  ;;  %v625_v15 = vadd.f32 %v617_v12, %v608_v56  ;;  %v632_v17 = vrot.slane %v624_v8, 2  ;;  %2098 = vmatpush3.bf16.msra.mxu1 %v2247_v45 }
 0x1f2   :  { %v627_v16 = vadd.f32 %v618_v3, %v610_v11  ;;  %2099 = vmatprep.subr.bf16.mxu1 %v2319_v44 }
 0x1f3   :  { %v626_v19 = vadd.f32 %v619_v13, %v609_v14  ;;  %v633_v20 = vrot.slane %v625_v15, 2 }
 0x1f4   :  { %v637_v18 = vrot.slane %v627_v16, 2 }
 0x1f5   :  { %v635_v21 = vrot.slane %v626_v19, 2  ;;  %v634_v22 = vsel %vm578_vm1, %v632_v17, %v633_v20  ;;  %2100 = vmatpush3.bf16.msra.mxu1 %v2248_v46 }
 0x1f6   :  { %v644_v23 = vsel %vm643_vm3, %v593_v35, %v634_v22  ;;  %v652_v36 = vadd.f32 %v2633_v31, %v637_v18  ;;  %2101 = vmatprep.subr.bf16.mxu1 %v2319_v44 }
 0x1f7   :  { %v649_v24 = vadd.f32 %v2633_v31, %v644_v23  ;;  %v636_v25 = vsel %vm578_vm1, %v633_v20, %v635_v21  ;;  %v638_v26 = vsel %vm578_vm1, %v635_v21, %v637_v18  ;;  %v1033_v21 = vld [vmem:[%s2923_s5 + $0x2] ss:$0 sm:$0xff] }
 0x1f8   :  { %v650_v27 = vadd.f32 %v2633_v31, %v636_v25  ;;  %v651_v28 = vadd.f32 %v2633_v31, %v638_v26  ;;  %v659_v41 = vmax.f32 %v652_v36, 0.0 }
 0x1f9   :  { %v656_v29 = vmax.f32 %v649_v24, 0.0  ;;  %2102 = vmatpush3.bf16.msra.mxu1 %v2249_v47 }
 0x1fa   :  { %v657_v30 = vmax.f32 %v650_v27, 0.0  ;;  %v658_v32 = vmax.f32 %v651_v28, 0.0  ;;  %v696_v31 = vpack.c.bf16 %v659_v41, %v659_v41  ;;  %2103 = vmatprep.subr.bf16.mxu1 %v2319_v44 }
 0x1fb   :  { %v694_v33 = vpack.c.bf16 %v656_v29, %v655_v51  ;;  %v1187_v34 = vrot.slane %v656_v29, 1  ;;  %v2253_v51 = vld [vmem:[%s2925_s3 + $0x38] sm:$0xff]  }
 0x1fc   :  { %v695_v37 = vpack.c.bf16 %v658_v32, %v657_v30  ;;  %v1188_v38 = vrot.slane %v657_v30, 1  ;;  %v2659_v35 = vrot.slane %v658_v32, 1 }
 0x1fd   :  { %868 = vmatmul.mubr.bf16.gmra.mrb[20].mxu1 %v694_v33  ;;  %2088 = vmatmul.mubr.bf16.vlgmr.msra.gmra.mrb[24].mxu0 %v694_v33 }
 0x1fe   :  { %2091 = vmatprep.mubr.bf16.mxu0 %v695_v37  ;;  %877 = vmatprep.mubr.bf16.mxu1 %v2318_v61  ;;  %v1189_v39 = vsel %vm558_vm0, %v1187_v34, %v1188_v38  ;;  %v2665_v40 = vsel %vm558_vm0, %v1188_v38, %v2659_v35 }
 0x1ff   :  { %v2668_v42 = vsel %vm1031_vm4, %v1179_v58, %v1189_v39  ;;  %2104 = vmatpush3.bf16.msra.mxu1 %v2250_v48  ;;  %1370 = vmatpush1.bf16.msra.mxu0 %v2254_v52 }
 0x200   :  { %2105 = vmatprep.subr.bf16.mxu1 %v2319_v44 }
 0x203   :  { %2106 = vmatpush3.bf16.msra.mxu1 %v2251_v49 }
 0x204   :  { %2107 = vmatprep.subr.bf16.mxu1 %v2319_v44 }
 0x205   :  { %878 = vmatmul.mubr.bf16.gmra.mrb[24].mxu1 %v695_v37  ;;  %2092 = vmatmul.mubr.bf16.gmra.mrb[28].mxu0 %v696_v31 }
 0x206   :  { %887 = vmatprep.mubr.bf16.mxu1 %v2318_v61  ;;  %1401 = vmatprep.mubr.bf16.mxu0 %v2318_v61 }
 0x207   :  { %2108 = vmatpush3.bf16.msra.mxu1 %v2252_v50 }
 0x208   :  { %2109 = vmatprep.subr.bf16.mxu1 %v2319_v44 }
 0x20b   :  { %2110 = vmatpush3.bf16.msra.mxu1 %v2253_v51 }
 0x20c   :  { %2123 = vmatprep.subr.bf16.mxu1 %v2319_v44 }
 0x20d   :  { %888 = vmatmul.mubr.bf16.gmra.mrb[28].mxu1 %v696_v31 }
 0x20e   :  { %2111 = vmatprep.mubr.msk.bf16.mxu1 %vm2320_vm5, %v2319_v44 }
 0x2be   :  { %v859_v54 = vpop.f32.mrb[16].mxu1 }
 0x2bf   :  { %v861_v55 = vpop.f32.mrb[17].mxu1 }
 0x2c0   :  { %v863_v56 = vpop.f32.mrb[18].mxu1  ;;  %v962_v58 = vrot.slane %v861_v55, 3 }
 0x2c1   :  { %v865_v57 = vpop.f32.mrb[19].mxu1 }
 0x2c2   :  { %v963_v59 = vrot.slane %v865_v57, 3 }
 0x2c4   :  { %v964_v60 = vsel %vm961_vm2, %v962_v58, %v963_v59 }
 0x2c5   :  { %v970_v62 = vadd.f32 %v964_v60, %v859_v54 }
 0x2d0   :  { %v869_v0 = vpop.f32.mrb[20].mxu1  ;;  %v2089_v1 = vpop.f32.mrb[24].mxu0 }
 0x2d1   :  { %v871_v3 = vpop.f32.mrb[21].mxu1  ;;  %v928_v4 = vpop.f32.mrb[25].mxu0  ;;  %v981_v8 = vrot.slane %v2089_v1, 6 }
 0x2d2   :  { %v965_v5 = vrot.slane %v871_v3, 3  ;;  %v873_v6 = vpop.f32.mrb[22].mxu1  ;;  %v2090_v7 = vpop.f32.mrb[26].mxu0  ;;  %v978_v14 = vrot.slane %v928_v4, 6 }
 0x2d3   :  { %v983_v9 = vrot.slane %v2090_v7, 6  ;;  %v875_v10 = vpop.f32.mrb[23].mxu1  ;;  %v931_v11 = vpop.f32.mrb[27].mxu0 }
 0x2d4   :  { %v966_v12 = vsel %vm961_vm2, %v963_v59, %v965_v5  ;;  %v972_v13 = vadd.f32 %v965_v5, %v869_v0  ;;  %v979_v15 = vrot.slane %v931_v11, 6  ;;  %v994_v30 = vrot.slane %v875_v10, 3 }
 0x2d5   :  { %v971_v16 = vadd.f32 %v966_v12, %v863_v56  ;;  %v984_v17 = vsel %vm977_vm6, %v981_v8, %v983_v9 }
 0x2d6   :  { %v990_v19 = vadd.f32 %v984_v17, %v972_v13  ;;  %v980_v20 = vsel %vm977_vm6, %v978_v14, %v979_v15  ;;  %v982_v18 = vsel %vm977_vm6, %v979_v15, %v981_v8  ;;  %v2257_v15 = vld [vmem:[%s2922_s2 + $0x188] ss:$12 sps:$4 sm:$0xff]   ;;  %v2258_v17 = vld [vmem:[%s2922_s2 + $0x198] ss:$12 sps:$4 sm:$0xff]  }
 0x2d7   :  { %v988_v22 = vadd.f32 %v980_v20, %v970_v62  ;;  %v989_v23 = vadd.f32 %v982_v18, %v971_v16  ;;  %v2260_v16 = vld [vmem:[%s2922_s2 + $0x19c] ss:$12 sps:$4 sm:$0xff]   ;;  %v2264_v20 = vld [vmem:[%s2922_s2 + $0x1b4] ss:$12 sps:$4 sm:$0xff]  }
 0x2d8   :  { %v879_v24 = vpop.f32.mrb[24].mxu1  ;;  %v2093_v25 = vpop.f32.mrb[28].mxu0  ;;  %1371 = vmatprep.subr.bf16.mxu0 %v2260_v16  ;;  %v2262_v18 = vld [vmem:[%s2922_s2 + $0x1b0] ss:$12 sps:$4 sm:$0xff]   ;;  %v2291_v16 = vld [vmem:[%s2925_s3 + $0x68] sm:$0xff]  }
 0x2d9   :  { %v1034_v26 = vadd.f32 %v1033_v21, %v988_v22  ;;  %v1035_v27 = vadd.f32 %v1033_v21, %v989_v23  ;;  %v881_v28 = vpop.f32.mrb[25].mxu1  ;;  %v944_v29 = vpop.f32.mrb[29].mxu0  ;;  %v1012_v39 = vrot.slane %v2093_v25, 6  ;;  %1372 = vmatpush1.bf16.msra.mxu0 %v2258_v17  ;;  %v2266_v22 = vld [vmem:[%s2922_s2 + $0x1c8] ss:$12 sps:$4 sm:$0xff]  }
 0x2da   :  { %v995_v32 = vrot.slane %v881_v28, 3  ;;  %v1008_v33 = vrot.slane %v944_v29, 6  ;;  %v883_v34 = vpop.f32.mrb[26].mxu1  ;;  %v2094_v36 = vpop.f32.mrb[30].mxu0  ;;  %1373 = vmatprep.subr.bf16.mxu0 %v2264_v20  ;;  %v2268_v23 = vld [vmem:[%s2922_s2 + $0x1cc] ss:$12 sps:$4 sm:$0xff]  }
 0x2db   :  { %v1039_v37 = vmax.f32 %v1034_v26, 0.0  ;;  %v1040_v38 = vmax.f32 %v1035_v27, 0.0  ;;  %v885_v41 = vpop.f32.mrb[27].mxu1  ;;  %v947_v31 = vpop.f32.mrb[31].mxu0  ;;  %v2272_v25 = vld [vmem:[%s2922_s2 + $0x1e4] ss:$12 sps:$4 sm:$0xff]  }
 0x2dc   :  { %v996_v43 = vsel %vm961_vm2, %v994_v30, %v995_v32  ;;  %v1009_v45 = vsel %vm977_vm6, %v983_v9, %v1008_v33  ;;  %v997_v46 = vrot.slane %v885_v41, 3  ;;  %v1010_v47 = vrot.slane %v947_v31, 6  ;;  %v2270_v26 = vld [vmem:[%s2922_s2 + $0x1e0] ss:$12 sps:$4 sm:$0xff]   ;;  %v2273_v27 = vld [vmem:[%s2922_s2 + $0x1e8] ss:$12 sps:$4 sm:$0xff]  }
 0x2dd   :  { %v1060_v48 = vpack.c.bf16 %v1040_v38, %v1039_v37  ;;  %v1002_v49 = vadd.f32 %v996_v43, %v873_v6  ;;  %1374 = vmatpush1.bf16.msra.mxu0 %v2262_v18  ;;  %v2276_v28 = vld [vmem:[%s2922_s2 + $0x1fc] ss:$12 sps:$4 sm:$0xff]   ;;  %v2274_v29 = vld [vmem:[%s2922_s2 + $0x1f8] ss:$12 sps:$4 sm:$0xff]   ;;  %v2277_v30 = vld [vmem:[%s2922_s2 + $0x200] ss:$12 sps:$4 sm:$0xff]  }
 0x2de   :  { %v998_v50 = vsel %vm961_vm2, %v995_v32, %v997_v46  ;;  %v1004_v51 = vadd.f32 %v997_v46, %v883_v34  ;;  %v1011_v52 = vsel %vm977_vm6, %v1008_v33, %v1010_v47  ;;  %v1013_v53 = vsel %vm977_vm6, %v1010_v47, %v1012_v39  ;;  %1375 = vmatprep.subr.bf16.mxu0 %v2268_v23  ;;  %v2280_v32 = vld [vmem:[%s2922_s2 + $0x214] ss:$12 sps:$4 sm:$0xff]   ;;  %v2278_v33 = vld [vmem:[%s2922_s2 + $0x210] ss:$12 sps:$4 sm:$0xff]   ;;  %v2281_v34 = vld [vmem:[%s2922_s2 + $0x218] ss:$12 sps:$4 sm:$0xff]  }
 0x2df   :  { %v1017_v54 = vadd.f32 %v1009_v45, %v1002_v49  ;;  %v1003_v55 = vadd.f32 %v998_v50, %v879_v24  ;;  %2112 = vmatmul.mubr.bf16.vlgmr.msra.gmra.mrb[32].mxu1 %v1060_v48  ;;  %v2269_v24 = vld [vmem:[%s2922_s2 + $0x1d0] ss:$12 sps:$4 sm:$0xff]   ;;  %v2284_v36 = vld [vmem:[%s2922_s2 + $0x22c] ss:$12 sps:$4 sm:$0xff]   ;;  %v2282_v37 = vld [vmem:[%s2922_s2 + $0x228] ss:$12 sps:$4 sm:$0xff]  }
 0x2e0   :  { %v1019_v56 = vadd.f32 %v1013_v53, %v1004_v51  ;;  %v889_v57 = vpop.f32.mrb[28].mxu1  ;;  %2115 = vmatprep.mubr.msk.bf16.mxu1 %vm2320_vm5, %v2319_v44  ;;  %2124 = vmatpush3.bf16.msra.mxu1 %v2257_v15  ;;  %v2285_v38 = vld [vmem:[%s2922_s2 + $0x230] ss:$12 sps:$4 sm:$0xff]   ;;  %v1063_v39 = vld [vmem:[%s2923_s5 + $0x3] ss:$0 sm:$0xff] }
 0x2e1   :  { %v1023_v58 = vrot.slane %v1017_v54, 6  ;;  %v1018_v59 = vadd.f32 %v1011_v52, %v1003_v55  ;;  %v890_v60 = vpop.f32.mrb[29].mxu1  ;;  %2125 = vmatprep.subr.bf16.mxu1 %v2319_v44  ;;  %1376 = vmatpush1.bf16.msra.mxu0 %v2266_v22  ;;  %v2289_v15 = vld [vmem:[%s2925_s3 + $0x58] sm:$0xff]   ;;  %v2292_v17 = vld [vmem:[%s2925_s3 + $0x70] sm:$0xff]   ;;  %v2294_v20 = vld [vmem:[%s2926_s4] ss:$8 sps:$4 sm:$0xff]  }
 0x2e2   :  { %v1026_v62 = vrot.slane %v1019_v56, 6  ;;  %v891_v0 = vpop.f32.mrb[30].mxu1  ;;  %1377 = vmatprep.subr.bf16.mxu0 %v2272_v25  ;;  %v2296_v18 = vld [vmem:[%s2926_s4 + $0x4] ss:$8 sps:$4 sm:$0xff]   ;;  %v2297_v22 = vld [vmem:[%s2926_s4 + $0x10] ss:$8 sps:$4 sm:$0xff]  }
 0x2e3   :  { %v1024_v1 = vrot.slane %v1018_v59, 6  ;;  %v892_v3 = vpop.f32.mrb[31].mxu1  ;;  %v1032_v4 = vsel %vm1031_vm4, %v990_v19, %v1023_v58  ;;  %v2261_v19 = vld [vmem:[%s2922_s2 + $0x1a0] ss:$12 sps:$4 sm:$0xff]   ;;  %v2303_v25 = vld [vmem:[%s2926_s4 + $0x30] ss:$8 sps:$4 sm:$0xff]  }
 0x2e4   :  { %v1036_v5 = vadd.f32 %v1033_v21, %v1032_v4  ;;  %2126 = vmatpush3.bf16.msra.mxu1 %v2261_v19  ;;  %v2293_v19 = vld [vmem:[%s2925_s3 + $0x78] sm:$0xff]   ;;  %v2300_v23 = vld [vmem:[%s2926_s4 + $0x20] ss:$8 sps:$4 sm:$0xff]  }
 0x2e5   :  { %v1025_v6 = vsel %vm977_vm6, %v1023_v58, %v1024_v1  ;;  %v1027_v7 = vsel %vm977_vm6, %v1024_v1, %v1026_v62  ;;  %2127 = vmatprep.subr.bf16.mxu1 %v2319_v44  ;;  %1378 = vmatpush1.bf16.msra.mxu0 %v2270_v26  ;;  %v2308_v26 = vld [vmem:[%s2926_s4 + $0x44] ss:$8 sps:$4 sm:$0xff]  }
 0x2e6   :  { %v1037_v8 = vadd.f32 %v1033_v21, %v1025_v6  ;;  %v1041_v9 = vmax.f32 %v1036_v5, 0.0  ;;  %v1038_v12 = vadd.f32 %v1033_v21, %v1027_v7  ;;  %v2265_v21 = vld [vmem:[%s2922_s2 + $0x1b8] ss:$12 sps:$4 sm:$0xff]   ;;  %1379 = vmatprep.subr.bf16.mxu0 %v2276_v28  ;;  %v2311_v28 = vld [vmem:[%s2926_s4 + $0x54] ss:$8 sps:$4 sm:$0xff]  }
 0x2e8   :  { %v1042_v10 = vmax.f32 %v1037_v8, 0.0  ;;  %v1043_v13 = vmax.f32 %v1038_v12, 0.0  ;;  %2128 = vmatpush3.bf16.msra.mxu1 %v2265_v21  ;;  %v2299_v21 = vld [vmem:[%s2926_s4 + $0x14] ss:$8 sps:$4 sm:$0xff]  }
 0x2e9   :  { %2129 = vmatprep.subr.bf16.mxu1 %v2319_v44  ;;  %1380 = vmatpush1.bf16.msra.mxu0 %v2274_v29  ;;  %v2309_v29 = vld [vmem:[%s2926_s4 + $0x50] ss:$8 sps:$4 sm:$0xff]  }
 0x2ea   :  { %v1061_v11 = vpack.c.bf16 %v1042_v10, %v1041_v9  ;;  %v1062_v14 = vpack.c.bf16 %v1043_v13, %v1043_v13  ;;  %1381 = vmatprep.subr.bf16.mxu0 %v2280_v32 }
 0x2ec   :  { %2116 = vmatmul.mubr.bf16.gmra.mrb[36].mxu1 %v1061_v11 }
 0x2ed   :  { %2119 = vmatprep.mubr.msk.bf16.mxu1 %vm2320_vm5, %v2319_v44  ;;  %2130 = vmatpush3.bf16.msra.mxu1 %v2269_v24  ;;  %v2305_v24 = vld [vmem:[%s2926_s4 + $0x34] ss:$8 sps:$4 sm:$0xff]  }
 0x2ee   :  { %2131 = vmatprep.subr.bf16.mxu1 %v2319_v44  ;;  %1382 = vmatpush1.bf16.msra.mxu0 %v2278_v33 }
 0x2ef   :  { %1383 = vmatprep.subr.bf16.mxu0 %v2284_v36 }
 0x2f1   :  { %2132 = vmatpush3.bf16.msra.mxu1 %v2273_v27  ;;  %v2306_v27 = vld [vmem:[%s2926_s4 + $0x40] ss:$8 sps:$4 sm:$0xff]  }
 0x2f2   :  { %2133 = vmatprep.subr.bf16.mxu1 %v2319_v44  ;;  %1384 = vmatpush1.bf16.msra.mxu0 %v2282_v37 }
 0x2f3   :  { %2143 = vmatprep.subr.bf16.mxu0 %v2319_v44 }
 0x2f4   :  { %2120 = vmatmul.mubr.bf16.gmra.mrb[40].mxu1 %v1062_v14  ;;  %v2287_v14 = vld [vmem:[%s2925_s3 + $0x48] sm:$0xff]  }
 0x2f5   :  { %2139 = vmatprep.mubr.msk.bf16.mxu1 %vm2320_vm5, %v2319_v44  ;;  %2134 = vmatpush3.bf16.msra.mxu1 %v2277_v30 }
 0x2f6   :  { %2135 = vmatprep.subr.bf16.mxu1 %v2319_v44 }
 0x2f9   :  { %2136 = vmatpush3.bf16.msra.mxu1 %v2281_v34 }
 0x2fa   :  { %2137 = vmatprep.subr.bf16.mxu1 %v2319_v44 }
 0x2fd   :  { %2138 = vmatpush3.bf16.msra.mxu1 %v2285_v38 }
 0x2fe   :  { %1691 = vmatprep.subr.bf16.mxu1 %v2296_v18 }
 0x3b2   :  { %v1146_v41 = vpop.f32.mrb[32].mxu1 }
 0x3b3   :  { %v1147_v31 = vadd.f32 %v1146_v41, %v1063_v39  ;;  %v2113_v43 = vpop.f32.mrb[33].mxu1 }
 0x3b4   :  { %v1149_v45 = vpop.f32.mrb[34].mxu1 }
 0x3b5   :  { %v1168_v46 = vmax.f32 %v1147_v31, 0.0  ;;  %v1150_v47 = vadd.f32 %v1149_v45, %v1063_v39  ;;  %v2114_v48 = vpop.f32.mrb[35].mxu1 }
 0x3b7   :  { %v1196_v49 = vadd.f32 %v2642_v63, %v1168_v46  ;;  %v1169_v50 = vmax.f32 %v1150_v47, 0.0  ;;  %v1462_v47 = vld [vmem:[%s2923_s5 + $0x4] ss:$0 sm:$0xff] }
 0x3b9   :  { %v1197_v51 = vadd.f32 %v2645_v2, %v1169_v50 }
 0x3bb   :  { %v1234_v52 = vsel %vm643_vm3, %v1196_v49, %v1197_v51  ;;  %v1574_v3 = vrot.slane %v1197_v51, 1 }
 0x3bf   :  { %v1154_v53 = vpop.f32.mrb[36].mxu1 }
 0x3c0   :  { %v1155_v54 = vadd.f32 %v1154_v53, %v1063_v39  ;;  %v2117_v55 = vpop.f32.mrb[37].mxu1  ;;  %v2312_v53 = vld [vmem:[%s2926_s4 + $0x60] ss:$8 sps:$4 sm:$0xff]  }
 0x3c1   :  { %v1157_v56 = vpop.f32.mrb[38].mxu1  ;;  %v2315_v55 = vld [vmem:[%s2926_s4 + $0x70] ss:$8 sps:$4 sm:$0xff]  }
 0x3c2   :  { %v1170_v57 = vmax.f32 %v1155_v54, 0.0  ;;  %v1158_v58 = vadd.f32 %v1157_v56, %v1063_v39  ;;  %v2118_v59 = vpop.f32.mrb[39].mxu1  ;;  %v2317_v54 = vld [vmem:[%s2926_s4 + $0x74] ss:$8 sps:$4 sm:$0xff]   ;;  %v1483_v56 = vld [vmem:[%s2923_s5 + $0x5] ss:$0 sm:$0xff] }
 0x3c4   :  { %v1198_v60 = vadd.f32 %v2668_v42, %v1170_v57  ;;  %v1171_v62 = vmax.f32 %v1158_v58, 0.0 }
 0x3c6   :  { %v1235_v0 = vsel %vm977_vm6, %v1234_v52, %v1198_v60  ;;  %v1199_v63 = vadd.f32 %v2665_v40, %v1171_v62  ;;  %v2286_v40 = vld [vmem:[%s2925_s3 + $0x40] sm:$0xff]  }
 0x3c7   :  { %v1236_v1 = vsel %vm1031_vm4, %v1235_v0, %v1198_v60  ;;  %v1162_v2 = vpop.f32.mrb[40].mxu1  ;;  %v2314_v52 = vld [vmem:[%s2926_s4 + $0x64] ss:$8 sps:$4 sm:$0xff]  }
 0x3c8   :  { %v1238_v4 = vsel %vm1237_vm7, %v1236_v1, %v1199_v63  ;;  %v1577_v5 = vrot.slane %v1199_v63, 3  ;;  %v1163_v6 = vadd.f32 %v1162_v2, %v1063_v39  ;;  %v2121_v7 = vpop.f32.mrb[41].mxu1  ;;  %v1601_v2 = vlaneseq }
 0x3c9   :  { %v1165_v8 = vpop.f32.mrb[42].mxu1 }
 0x3ca   :  { %v1172_v9 = vmax.f32 %v1163_v6, 0.0  ;;  %v2122_v10 = vpop.f32.mrb[43].mxu1  ;;  %v2820_v11 = vsel %vm643_vm3, %v1574_v3, %v1577_v5  ;;  %v1602_v3 = vshrl.u32 %v1601_v2, 7  ;;  %v1936_v5 = vld [vmem:[%s2923_s5 + $0x6] ss:$8 sm:$0x3] }
 0x3cc   :  { %v1200_v42 = vadd.f32 %v2659_v35, %v1172_v9  ;;  %v2288_v35 = vld [vmem:[%s2925_s3 + $0x50] sm:$0xff]   ;;  %v1607_v6 = vsub.s32 1, %v1602_v3 }
 0x3ce   :  { %v1239_v12 = vsel %vm961_vm2, %v1238_v4, %v1200_v42  ;;  %v1603_v4 = vsub.s32 0, %v1602_v3  ;;  %v1608_v8 = vrot.slane %v1936_v5, %v1607_v6 }
 0x3cf   :  { %v1240_v13 = vpack.c.bf16 %v1239_v12, %v1239_v12 }
 0x3d0   :  { %v1604_v7 = vrot.slane %v1936_v5, %v1603_v4 }
 0x3d1   :  { %1402 = vmatmul.mubr.bf16.vlgmr.msra.gmra.mrb[32].mxu0 %v1240_v13  ;;  %2140 = vmatmul.mubr.bf16.vlgmr.msra.gmra.mrb[44].mxu1 %v1240_v13 }
 0x3d2   :  { %2144 = vmatpush3.bf16.msra.mxu0 %v2286_v40  ;;  %2159 = vmatprep.mubr.msk.bf16.mxu0 %vm2320_vm5, %v2319_v44 }
 0x3d3   :  { %2145 = vmatprep.subr.bf16.mxu0 %v2319_v44  ;;  %1723 = vmatprep.mubr.bf16.mxu1 %v2318_v61  ;;  %v2290_v61 = vld [vmem:[%s2925_s3 + $0x60] sm:$0xff]  }
 0x3d4   :  { %1692 = vmatpush1.bf16.msra.mxu1 %v2294_v20 }
 0x3d5   :  { %1693 = vmatprep.subr.bf16.mxu1 %v2299_v21 }
 0x3d6   :  { %2146 = vmatpush3.bf16.msra.mxu0 %v2287_v14 }
 0x3d7   :  { %2147 = vmatprep.subr.bf16.mxu0 %v2319_v44 }
 0x3d8   :  { %1694 = vmatpush1.bf16.msra.mxu1 %v2297_v22 }
 0x3da   :  { %2148 = vmatpush3.bf16.msra.mxu0 %v2288_v35 }
 0x3db   :  { %2149 = vmatprep.subr.bf16.mxu0 %v2319_v44 }
 0x3de   :  { %2150 = vmatpush3.bf16.msra.mxu0 %v2289_v15 }
 0x3df   :  { %2151 = vmatprep.subr.bf16.mxu0 %v2319_v44 }
 0x3e2   :  { %2152 = vmatpush3.bf16.msra.mxu0 %v2290_v61 }
 0x3e3   :  { %2153 = vmatprep.subr.bf16.mxu0 %v2319_v44 }
 0x3e6   :  { %2154 = vmatpush3.bf16.msra.mxu0 %v2291_v16 }
 0x3e7   :  { %2155 = vmatprep.subr.bf16.mxu0 %v2319_v44 }
 0x3ea   :  { %2156 = vmatpush3.bf16.msra.mxu0 %v2292_v17 }
 0x3eb   :  { %2157 = vmatprep.subr.bf16.mxu0 %v2319_v44  ;;  %v2302_v44 = vld [vmem:[%s2926_s4 + $0x24] ss:$8 sps:$4 sm:$0xff]  }
 0x3ec   :  { %1695 = vmatprep.subr.bf16.mxu1 %v2302_v44 }
 0x3ed   :  { %1696 = vmatpush1.bf16.msra.mxu1 %v2300_v23 }
 0x3ee   :  { %2158 = vmatpush3.bf16.msra.mxu0 %v2293_v19  ;;  %1697 = vmatprep.subr.bf16.mxu1 %v2305_v24 }
 0x3f1   :  { %1698 = vmatpush1.bf16.msra.mxu1 %v2303_v25 }
 0x3f2   :  { %1699 = vmatprep.subr.bf16.mxu1 %v2308_v26 }
 0x3f5   :  { %1700 = vmatpush1.bf16.msra.mxu1 %v2306_v27 }
 0x3f6   :  { %1701 = vmatprep.subr.bf16.mxu1 %v2311_v28 }
 0x3f9   :  { %1702 = vmatpush1.bf16.msra.mxu1 %v2309_v29 }
 0x3fa   :  { %1703 = vmatprep.subr.bf16.mxu1 %v2314_v52 }
 0x3fd   :  { %1704 = vmatpush1.bf16.msra.mxu1 %v2312_v53 }
 0x3fe   :  { %1705 = vmatprep.subr.bf16.mxu1 %v2317_v54 }
 0x401   :  { %1706 = vmatpush1.bf16.msra.mxu1 %v2315_v55 }
 0x4a4   :  { %v1403_v30 = vpop.f32.mrb[32].mxu0  ;;  %v1444_v32 = vpop.f32.mrb[44].mxu1 }
 0x4a5   :  { %v1405_v33 = vpop.f32.mrb[33].mxu0  ;;  %v2141_v34 = vpop.f32.mrb[45].mxu1  ;;  %v1455_v31 = vrot.slane %v1444_v32, 2 }
 0x4a6   :  { %v1451_v36 = vrot.slane %v1405_v33, 1  ;;  %v1407_v37 = vpop.f32.mrb[34].mxu0  ;;  %v1447_v38 = vpop.f32.mrb[46].mxu1 }
 0x4a7   :  { %v1408_v39 = vpop.f32.mrb[35].mxu0  ;;  %v2142_v41 = vpop.f32.mrb[47].mxu1 }
 0x4a8   :  { %v1453_v43 = vadd.f32 %v1451_v36, %v1403_v30 }
 0x4aa   :  { %v1457_v45 = vadd.f32 %v1455_v31, %v1453_v43 }
 0x4ac   :  { %v1459_v46 = vrot.slane %v1457_v45, 2 }
 0x4ae   :  { %v1461_v48 = vsel %vm643_vm3, %v1457_v45, %v1459_v46 }
 0x4af   :  { %v1463_v49 = vadd.f32 %v1462_v47, %v1461_v48 }
 0x4b1   :  { %v1464_v50 = vmax.f32 %v1463_v49, 0.0 }
 0x4b3   :  { %v1482_v51 = vpack.c.bf16 %v1464_v50, %v1464_v50 }
 0x4b5   :  { %2160 = vmatmul.mubr.bf16.vlgmr.msra.gmra.mrb[36].mxu0 %v1482_v51 }
 0x588   :  { %v1566_v57 = vpop.f32.mrb[36].mxu0 }
 0x589   :  { %v1567_v58 = vadd.f32 %v1566_v57, %v1483_v56  ;;  %v2161_v59 = vpop.f32.mrb[37].mxu0 }
 0x58a   :  { %v1569_v60 = vpop.f32.mrb[38].mxu0 }
 0x58b   :  { %v1572_v62 = vmax.f32 %v1567_v58, 0.0  ;;  %v2162_v0 = vpop.f32.mrb[39].mxu0 }
 0x58d   :  { %v1580_v63 = vadd.f32 %v2820_v11, %v1572_v62 }
 0x58f   :  { %v1597_v1 = vpack.c.bf16 %v1580_v63, %v1580_v63 }
 0x591   :  { %1724 = vmatmul.mubr.bf16.vlgmr.msra.gmra.mrb[48].mxu1 %v1597_v1 }
 0x664   :  { %v1725_v9 = vpop.f32.mrb[48].mxu1 }
 0x665   :  { %v1726_v10 = vadd.f32 %v1725_v9, %v1604_v7  ;;  %v1727_v42 = vpop.f32.mrb[49].mxu1 }
 0x666   :  { %v1728_v12 = vadd.f32 %v1727_v42, %v1608_v8  ;;  %v1729_v40 = vpop.f32.mrb[50].mxu1 }
 0x667   :  { %v1730_v13 = vpop.f32.mrb[51].mxu1 }
 0x668   :  { %v1734_v14 = vcombine.low %v1726_v10, %v1728_v12 }
 0x66a   :  { %1953 = vst.sshfl [vmem:[%s2927_s7] sm:$0x33 pattern:$0x76325410] %v1734_v14 }

</bundles_post_ra>
